<compile_context>
chip_gen: v7x
topology: tpu7x:2x2x1
jax: 0.10.0
libtpu: 0.0.40
codegen_flags: <defaults>
</compile_context>

<pallas_src>
import functools

import jax
import jax.numpy as jnp
import numpy as np
from jax.experimental import pallas as pl
from jax.experimental.pallas import tpu as pltpu


_LANE_ANCHORS = 128                       # anchors folded into the lane axis
_VMEM_BUDGET_BYTES = 26 * 1024 * 1024     # headroom under the 32 MiB scoped default


def _wsl1_kernel(*refs, beta, has_w, has_cw):
    """Elementwise weighted smooth-L1 on one lane-dense (tile_rows, 128*C) block.

    Ref order: [cw_row], x, t, [w, expand], out.
    """
    idx = 0
    if has_cw:
        cw_ref = refs[idx]; idx += 1
    x_ref = refs[idx]; idx += 1
    t_ref = refs[idx]; idx += 1
    if has_w:
        w_ref = refs[idx]; idx += 1
        e_ref = refs[idx]; idx += 1
    o_ref = refs[idx]

    x = x_ref[...].astype(jnp.float32)
    t = t_ref[...].astype(jnp.float32)

    # torch: target = where(isnan(target), input, target); diff = input - target
    t = jnp.where(jnp.isnan(t), x, t)
    diff = x - t
    if has_cw:
        diff = diff * cw_ref[...].astype(jnp.float32)     # (1, L): sublane broadcast

    n = jnp.abs(diff)
    if beta < 1e-5:                                       # static python branch (trace time)
        loss = n
    else:
        loss = jnp.where(n < beta, (0.5 / beta) * (n * n), n - 0.5 * beta)

    if has_w:
        # Expand per-anchor weights (tile_r, 128) -> (tile_r, 128*C) on the idle MXU.
        # e_ref is the 0/1 matrix E[a, a*C + c] = 1, so (w @ E)[r, l] == w[r, l // C].
        w_exp = jnp.dot(w_ref[...].astype(jnp.float32), e_ref[...],
                        preferred_element_type=jnp.float32,
                        precision=jax.lax.Precision.HIGHEST)
        loss = loss * w_exp

    o_ref[...] = loss.astype(o_ref.dtype)


def _pick_tile_rows(n_rows, lane, itemsize, has_w):
    """Largest row tile fitting the double-buffered VMEM budget."""
    budget = _VMEM_BUDGET_BYTES - 2 * 1024 * 1024          # reserve for constants (cw row, E)
    per_row = 2 * (3 * lane * itemsize                     # x, t, out (double-buffered)
                   + (_LANE_ANCHORS * 4 if has_w else 0))  # compact f32 anchor weights
    rows = max(8, (budget // per_row) // 8 * 8)            # multiple of 8 (sublane tiling)
    return n_rows if rows >= n_rows else rows              # equal-to-full-dim block is legal


def weighted_smooth_l1_loss(inp, target, weights=None, *, beta=1.0 / 9.0,
                            code_weights=None):
    """JAX/Pallas equivalent of WeightedSmoothL1Loss.forward.

    inp, target: (B, A, C) float; weights: (B, A) or None; code_weights: (C,) or None.
    Returns (B, A, C) loss in inp.dtype (no reduction).
    """
    B, A, C = inp.shape
    N = B * A
    L = _LANE_ANCHORS * C
    R = pl.cdiv(N, _LANE_ANCHORS)
    N_pad = R * _LANE_ANCHORS
    pad = N_pad - N

    has_w = weights is not None
    has_cw = code_weights is not None

    # Lane-dense views (row-major reshapes are free; padding only when N % 128 != 0).
    x2 = inp.reshape(N, C)
    t2 = target.reshape(N, C)
    if pad:
        x2 = jnp.pad(x2, ((0, pad), (0, 0)))
        t2 = jnp.pad(t2, ((0, pad), (0, 0)))
    x2 = x2.reshape(R, L)
    t2 = t2.reshape(R, L)

    itemsize = int(jnp.dtype(inp.dtype).itemsize)
    tile_rows = _pick_tile_rows(R, L, itemsize, has_w)
    grid = (pl.cdiv(R, tile_rows),)

    data_spec = pl.BlockSpec((tile_rows, L), lambda i: (i, 0))

    args, in_specs = [], []
    if has_cw:
        cw = jnp.asarray(code_weights, jnp.float32).reshape(C)
        cw_row = jnp.tile(cw, _LANE_ANCHORS).reshape(1, L)   # code pattern along lanes
        args.append(cw_row)
        in_specs.append(pl.BlockSpec((1, L), lambda i: (0, 0)))

    args += [x2, t2]
    in_specs += [data_spec, data_spec]

    if has_w:
        wN = weights.reshape(N).astype(jnp.float32)
        if pad:
            wN = jnp.pad(wN, (0, pad))
        w2 = wN.reshape(R, _LANE_ANCHORS)                     # compact: no xC expansion in HBM
        # 0/1 expansion matrix E[a, a*C + c] = 1 (constant, resident in VMEM across the grid).
        expand = np.kron(np.eye(_LANE_ANCHORS, dtype=np.float32),
                         np.ones((1, C), dtype=np.float32))
        args += [w2, jnp.asarray(expand)]
        in_specs += [pl.BlockSpec((tile_rows, _LANE_ANCHORS), lambda i: (i, 0)),
                     pl.BlockSpec((_LANE_ANCHORS, L), lambda i: (0, 0))]

    out = pl.pallas_call(
        functools.partial(_wsl1_kernel, beta=float(beta), has_w=has_w, has_cw=has_cw),
        out_shape=jax.ShapeDtypeStruct((R, L), inp.dtype),
        grid_spec=pltpu.PrefetchScalarGridSpec(
            num_scalar_prefetch=0,
            grid=grid,
            in_specs=in_specs,
            out_specs=data_spec),
        compiler_params=pltpu.CompilerParams(
            dimension_semantics=("parallel",),
            vmem_limit_bytes=32 * 1024 * 1024),
    )(*args)

    out = out.reshape(N_pad, C)
    if pad:
        out = out[:N]
    return out.reshape(B, A, C)


def _reference(inp, target, weights=None, *, beta=1.0 / 9.0, code_weights=None):
    """Pure-JAX mirror of the torch forward."""
    tgt = jnp.where(jnp.isnan(target), inp, target)
    diff = inp - tgt
    if code_weights is not None:
        diff = diff * jnp.asarray(code_weights, diff.dtype).reshape(1, 1, -1)
    n = jnp.abs(diff)
    if beta < 1e-5:
        loss = n
    else:
        loss = jnp.where(n < beta, 0.5 * n * n / beta, n - 0.5 * beta)
    if weights is not None:
        loss = loss * weights[..., None]
    return loss


if __name__ == "__main__":
    B, A, C = 2, 321, 7          # batch, #anchors, #codes (7-dim box code, typical pcdet)
    key = jax.random.PRNGKey(0)
    k1, k2, k3, k4 = jax.random.split(key, 4)

    inp = jax.random.normal(k1, (B, A, C), dtype=jnp.float32)
    target = jax.random.normal(k2, (B, A, C), dtype=jnp.float32) * 0.3
    # sprinkle NaNs into the target to exercise the isnan path
    nan_mask = jax.random.bernoulli(k3, 0.1, (B, A, C))
    target = jnp.where(nan_mask, jnp.nan, target)
    weights = jax.random.uniform(k4, (B, A), dtype=jnp.float32)
    code_weights = [1.0, 1.0, 1.0, 1.0, 1.0, 2.0, 0.5]

    # full path: code_weights + per-anchor weights, smooth-L1 regime
    out = weighted_smooth_l1_loss(inp, target, weights,
                                  beta=1.0 / 9.0, code_weights=code_weights)
    out = jax.block_until_ready(out)
    ref = _reference(inp, target, weights, beta=1.0 / 9.0, code_weights=code_weights)
    np.testing.assert_allclose(np.asarray(out), np.asarray(ref), rtol=1e-5, atol=1e-6)

    # no-weights / no-code-weights path, pure-L1 regime (beta < 1e-5)
    out2 = weighted_smooth_l1_loss(inp, target, None, beta=1e-6, code_weights=None)
    out2 = jax.block_until_ready(out2)
    ref2 = _reference(inp, target, None, beta=1e-6, code_weights=None)
    np.testing.assert_allclose(np.asarray(out2), np.asarray(ref2), rtol=1e-5, atol=1e-6)

    print("KERNEL_OK")
</pallas_src>

<mosaic_0001>
module attributes {stable_mosaic.version = 11 : i64} {
  func.func @_wsl1_kernel(%arg0: i32, %arg1: memref<1x896xf32, #tpu.memory_space<vmem>>, %arg2: memref<6x896xf32, #tpu.memory_space<vmem>>, %arg3: memref<6x896xf32, #tpu.memory_space<vmem>>, %arg4: memref<6x128xf32, #tpu.memory_space<vmem>>, %arg5: memref<128x896xf32, #tpu.memory_space<vmem>>, %arg6: memref<6x896xf32, #tpu.memory_space<vmem>>) attributes {dimension_semantics = [#tpu.dimension_semantics<parallel>], iteration_bounds = array<i64: 1>, scalar_prefetch = 0 : i64, scratch_operands = 0 : i64, tpu.core_type = #tpu.core_type<tc>, window_params = [{pipeline_mode = #tpu.pipeline_mode<synchronous>, transform_indices = @transform_0, window_bounds = array<i64: 1, 896>}, {transform_indices = @transform_1, window_bounds = array<i64: 6, 896>}, {transform_indices = @transform_2, window_bounds = array<i64: 6, 896>}, {transform_indices = @transform_3, window_bounds = array<i64: 6, 128>}, {pipeline_mode = #tpu.pipeline_mode<synchronous>, transform_indices = @transform_4, window_bounds = array<i64: 128, 896>}, {transform_indices = @transform_5, window_bounds = array<i64: 6, 896>}]} {
    %c0 = arith.constant 0 : index
    %c0_0 = arith.constant 0 : index
    %0 = vector.load %arg2[%c0, %c0_0] : memref<6x896xf32, #tpu.memory_space<vmem>>, vector<6x896xf32>
    %c0_1 = arith.constant 0 : index
    %c0_2 = arith.constant 0 : index
    %1 = vector.load %arg3[%c0_1, %c0_2] : memref<6x896xf32, #tpu.memory_space<vmem>>, vector<6x896xf32>
    %2 = arith.cmpf one, %1, %1 : vector<6x896xf32>
    %3 = arith.select %2, %0, %1 : vector<6x896xi1>, vector<6x896xf32>
    %4 = arith.subf %0, %3 : vector<6x896xf32>
    %c0_3 = arith.constant 0 : index
    %c0_4 = arith.constant 0 : index
    %5 = vector.load %arg1[%c0_3, %c0_4] : memref<1x896xf32, #tpu.memory_space<vmem>>, vector<1x896xf32>
    %6 = vector.broadcast %5 : vector<1x896xf32> to vector<6x896xf32>
    %7 = arith.mulf %4, %6 : vector<6x896xf32>
    %8 = math.absf %7 : vector<6x896xf32>
    %cst = arith.constant 0.111111112 : f32
    %9 = vector.broadcast %cst : f32 to vector<6x896xf32>
    %10 = arith.cmpf olt, %8, %9 : vector<6x896xf32>
    %11 = arith.mulf %8, %8 : vector<6x896xf32>
    %cst_5 = arith.constant 4.500000e+00 : f32
    %12 = vector.broadcast %cst_5 : f32 to vector<6x896xf32>
    %13 = arith.mulf %12, %11 : vector<6x896xf32>
    %cst_6 = arith.constant 0.055555556 : f32
    %14 = vector.broadcast %cst_6 : f32 to vector<6x896xf32>
    %15 = arith.subf %8, %14 : vector<6x896xf32>
    %16 = arith.select %10, %13, %15 : vector<6x896xi1>, vector<6x896xf32>
    %c0_7 = arith.constant 0 : index
    %c0_8 = arith.constant 0 : index
    %17 = vector.load %arg4[%c0_7, %c0_8] : memref<6x128xf32, #tpu.memory_space<vmem>>, vector<6x128xf32>
    %c0_9 = arith.constant 0 : index
    %c0_10 = arith.constant 0 : index
    %18 = vector.load %arg5[%c0_9, %c0_10] : memref<128x896xf32, #tpu.memory_space<vmem>>, vector<128x896xf32>
    %cst_11 = arith.constant dense<0.000000e+00> : vector<6x896xf32>
    %19 = tpu.matmul %17, %18, %cst_11 {dimension_numbers = #tpu.dot_dimension_numbers<[1], [0], [0], [1], [0, 0, 1, 1], [], []>, precision = #tpu.contract_precision<fp32>} : vector<6x128xf32>, vector<128x896xf32>, vector<6x896xf32> -> vector<6x896xf32>
    %20 = arith.mulf %16, %19 : vector<6x896xf32>
    %c0_12 = arith.constant 0 : index
    %c0_13 = arith.constant 0 : index
    %21 = vector.load %arg6[%c0_12, %c0_13] : memref<6x896xf32, #tpu.memory_space<vmem>>, vector<6x896xf32>
    tpu.vector_store %arg6[%c0_12, %c0_13], %20 {strides = array<i32>} : memref<6x896xf32, #tpu.memory_space<vmem>>, vector<6x896xf32>,
    return
  }
  func.func @transform_0(%arg0: i32) -> (i32, i32) {
    %c0_i32 = arith.constant 0 : i32
    %c0_i32_0 = arith.constant 0 : i32
    %c0_i32_1 = arith.constant 0 : i32
    return %c0_i32, %c0_i32_0 : i32, i32
  }
  func.func @transform_1(%arg0: i32) -> (i32, i32) {
    %c0_i32 = arith.constant 0 : i32
    %c0_i32_0 = arith.constant 0 : i32
    return %arg0, %c0_i32 : i32, i32
  }
  func.func @transform_2(%arg0: i32) -> (i32, i32) {
    %c0_i32 = arith.constant 0 : i32
    %c0_i32_0 = arith.constant 0 : i32
    return %arg0, %c0_i32 : i32, i32
  }
  func.func @transform_3(%arg0: i32) -> (i32, i32) {
    %c0_i32 = arith.constant 0 : i32
    %c0_i32_0 = arith.constant 0 : i32
    return %arg0, %c0_i32 : i32, i32
  }
  func.func @transform_4(%arg0: i32) -> (i32, i32) {
    %c0_i32 = arith.constant 0 : i32
    %c0_i32_0 = arith.constant 0 : i32
    %c0_i32_1 = arith.constant 0 : i32
    return %c0_i32, %c0_i32_0 : i32, i32
  }
  func.func @transform_5(%arg0: i32) -> (i32, i32) {
    %c0_i32 = arith.constant 0 : i32
    %c0_i32_0 = arith.constant 0 : i32
    return %arg0, %c0_i32 : i32, i32
  }
}

</mosaic_0001>

<bundles_post_ra>
// kernel: tpu_custom_call.1
= control target key start
LH: loop header
LB: loop body
LE: loop exit
PB: predicated region body
PF: predicated region fallthrough
CT: control target
= control target key end

     0   :  { %10 = vsyncpa [#allocation3], 0  ;;  %s6377_s0 = inlined_call_operand.hbm [shape: f32[1,896], index: 0, kind: input, shape index: {}]   ;;  %s6378_s1 = inlined_call_operand.hbm [shape: f32[6,896], index: 1, kind: input, shape index: {}]   ;;  %s6379_s2 = inlined_call_operand.hbm [shape: f32[6,896], index: 2, kind: input, shape index: {}]   ;;  %s6380_s3 = inlined_call_operand.vmem [shape: f32[6,128], index: 3, kind: input, shape index: {}]   ;;  %s6381_s4 = inlined_call_operand.hbm [shape: f32[128,896], index: 4, kind: input, shape index: {}]   ;;  %s6382_s5 = inlined_call_operand.hbm [shape: f32[6,896], index: 5, kind: output, shape index: {}]  }
   0x1   :  { %11 = vsyncpa [#allocation6], 0 }
   0x2   :  { %12 = vsyncpa [#allocation9], 0 }
   0x3   :  { %13 = vsyncpa [#allocation4], 0  ;;  %s4748_s18 = smov [#allocation5]   ;;  %s4749_s20 = smov [#allocation2]  }
   0x4   :  { %s30_s19 = sshll.u32 %s4748_s18, 4  ;;  %s20_s21 = sshll.u32 %s4749_s20, 4  ;;  %s31_s19 = int_to_ptr.vmem [resolvable:$true] %s30_s19  ;;  %s21_s21 = int_to_ptr.vmem [resolvable:$true] %s20_s21 }
   0x5   :  { %s4630_s24 = scalar_lea.hbm %s6378_s1, 896 }
   0x6   :  { %p4631_p0 = scmp.ne.s32.totalorder %s6378_s1, %s4630_s24  ;;  %p4634_p1 = scmp.lt.u32.totalorder %s4630_s24, %s6378_s1 }
   0x8   :  { %p4636_p2 = pnand %p4634_p1, %p4631_p0 }
   0xa   :  { %4639 = shalt.err (!%p4636_p2)
}
   0xb   :  { %s4640_s29 = scalar_lea.vmem %s31_s19, 896  ;;  %p4645_p4 = scmp.lt.s32.totalorder %s31_s19, %s31_s19 }
   0xc   :  { %p4641_p3 = scmp.ne.s32.totalorder %s31_s19, %s4640_s29  ;;  %p4646_p5 = scmp.lt.s32.totalorder %s4640_s29, %s4640_s29 }
   0xe   :  { %p4647_p6 = por %p4646_p5, %p4645_p4 }
  0x10   :  { %p4648_p7 = pnand %p4647_p6, %p4641_p3 }
  0x12   :  { %4651 = shalt.err (!%p4648_p7)
}
  0x13   :  { %33 = dma.hbm_to_vmem [thread:$0]  %s6378_s1, 896, %s31_s19, [#allocation6]  }
  0x14   :  { %s4652_s9 = scalar_lea.hbm %s6377_s0, 112 }
  0x15   :  { %p4653_p8 = scmp.ne.s32.totalorder %s6377_s0, %s4652_s9  ;;  %p4656_p9 = scmp.lt.u32.totalorder %s4652_s9, %s6377_s0 }
  0x17   :  { %p4658_p10 = pnand %p4656_p9, %p4653_p8 }
  0x19   :  { %4661 = shalt.err (!%p4658_p10)
}
  0x1a   :  { %s4662_s14 = scalar_lea.vmem %s21_s21, 112  ;;  %s4666_s15 = scalar_lea.vmem %s21_s21, 128 }
  0x1b   :  { %p4663_p11 = scmp.ne.s32.totalorder %s21_s21, %s4662_s14  ;;  %p4667_p12 = scmp.lt.s32.totalorder %s21_s21, %s21_s21 }
  0x1c   :  { %p4668_p13 = scmp.lt.s32.totalorder %s4666_s15, %s4662_s14 }
  0x1e   :  { %p4669_p0 = por %p4668_p13, %p4667_p12 }
  0x20   :  { %p4670_p1 = pnand %p4669_p0, %p4663_p11 }
  0x22   :  { %4673 = shalt.err (!%p4670_p1)
}
  0x23   :  { %23 = dma.hbm_to_vmem [thread:$0]  %s6377_s0, 112, %s21_s21, [#allocation3]  }
  0x24   :  { %s4750_s17 = smov [#allocation7]   ;;  %s4751_s19 = smov [#allocation8]  }
  0x25   :  { %s40_s18 = sshll.u32 %s4750_s17, 4  ;;  %s51_s20 = sshll.u32 %s4751_s19, 4  ;;  %s41_s18 = int_to_ptr.vmem [resolvable:$true] %s40_s18  ;;  %s4812_s20 = int_to_ptr.vmem [resolvable:$true] %s51_s20 }
  0x26   :  { %s4674_s24 = scalar_lea.hbm %s6379_s2, 896 }
  0x27   :  { %p4675_p2 = scmp.ne.s32.totalorder %s6379_s2, %s4674_s24  ;;  %p4678_p3 = scmp.lt.u32.totalorder %s4674_s24, %s6379_s2 }
  0x29   :  { %p4680_p4 = pnand %p4678_p3, %p4675_p2 }
  0x2b   :  { %4683 = shalt.err (!%p4680_p4)
}
  0x2c   :  { %s4684_s0 = scalar_lea.vmem %s41_s18, 896  ;;  %p4689_p6 = scmp.lt.s32.totalorder %s41_s18, %s41_s18 }
  0x2d   :  { %p4685_p5 = scmp.ne.s32.totalorder %s41_s18, %s4684_s0  ;;  %p4690_p7 = scmp.lt.s32.totalorder %s4684_s0, %s4684_s0 }
  0x2f   :  { %p4691_p8 = por %p4690_p7, %p4689_p6 }
  0x31   :  { %p4692_p9 = pnand %p4691_p8, %p4685_p5 }
  0x33   :  { %4695 = shalt.err (!%p4692_p9)
}
  0x34   :  { %43 = dma.hbm_to_vmem [thread:$0]  %s6379_s2, 896, %s41_s18, [#allocation6]  }
  0x35   :  { %s4696_s7 = scalar_lea.hbm %s6381_s4, 14336 }
  0x36   :  { %p4697_p10 = scmp.ne.s32.totalorder %s6381_s4, %s4696_s7  ;;  %p4700_p11 = scmp.lt.u32.totalorder %s4696_s7, %s6381_s4 }
  0x38   :  { %p4702_p12 = pnand %p4700_p11, %p4697_p10 }
  0x3a   :  { %4705 = shalt.err (!%p4702_p12)
}
  0x3b   :  { %s4706_s12 = scalar_lea.vmem %s4812_s20, 14336  ;;  %p4711_p0 = scmp.lt.s32.totalorder %s4812_s20, %s4812_s20 }
  0x3c   :  { %p4707_p13 = scmp.ne.s32.totalorder %s4812_s20, %s4706_s12  ;;  %p4712_p1 = scmp.lt.s32.totalorder %s4706_s12, %s4706_s12 }
  0x3e   :  { %p4713_p2 = por %p4712_p1, %p4711_p0 }
  0x40   :  { %p4714_p3 = pnand %p4713_p2, %p4707_p13 }
  0x42   :  { %4717 = shalt.err (!%p4714_p3)
}
  0x43   :  { %s4752_s2 = smov 896   ;;  %s4753_s13 = smov 56  }
  0x44   :  { %57 = dma.hbm_to_vmem [thread:$0]  %s6381_s4, 14336, %s4812_s20, [#allocation9], %s4752_s2, %s4752_s2, %s4753_s13  }
  0x45   :  { %4740 = dma.done.wait [#allocation3], 112  }
  0x46   :  { %4741 = vsyncadd [#allocation3], 4294967184 }
  0x47   :  { %4742 = dma.done.wait [#allocation6], 1792  }
  0x48   :  { %4743 = vsyncadd [#allocation6], 4294965504 }
  0x49   :  { %4744 = dma.done.wait [#allocation9], 14336  }
  0x4a   :  { %4745 = vsyncadd [#allocation9], 4294952960  ;;  %v6383_v0 = vmov 0.0   ;;  %v193_v1 = vld [vmem:[#allocation8 + $0x8] sm:$0xff]  ;;  %v200_v2 = vld [vmem:[#allocation8 + $0x40] sm:$0xff]  ;;  %vm4756_vm0 = vmmov 0  }
  0x4b   :  { %400 = vmatprep.mubr.f32.mxu0 %v6383_v0  ;;  %1255 = vmatprep.mubr.f32.mxu1 %v6383_v0  ;;  %v195_v3 = vld [vmem:[#allocation8 + $0x18] sm:$0xff]  ;;  %v304_v4 = vand.u32 4294901760, %v193_v1  ;;  %v308_v5 = vand.u32 4294901760, %v200_v2  ;;  %v202_v6 = vld [vmem:[#allocation8 + $0x50] sm:$0xff]  ;;  %v192_v8 = vld [vmem:[#allocation8] sm:$0xff] }
  0x4c   :  { %v1159_v7 = vand.u32 4294901760, %v195_v3  ;;  %v199_v9 = vld [vmem:[#allocation8 + $0x38] sm:$0xff]  ;;  %v1163_v10 = vand.u32 4294901760, %v202_v6  ;;  %v306_v11 = vand.u32 4294901760, %v192_v8  ;;  %v194_v13 = vld [vmem:[#allocation8 + $0x10] sm:$0xff]  ;;  %v201_v14 = vld [vmem:[#allocation8 + $0x48] sm:$0xff] }
  0x4d   :  { %v310_v12 = vand.u32 4294901760, %v199_v9  ;;  %v207_v15 = vld [vmem:[#allocation8 + $0x78] sm:$0xff]  ;;  %v4845_v16 = vpack.c.bf16 %v308_v5, %v304_v4  ;;  %v4847_v17 = vsub.f32 %v193_v1, %v304_v4  ;;  %v4849_v18 = vsub.f32 %v200_v2, %v308_v5  ;;  %v214_v20 = vld [vmem:[#allocation8 + $0xb0] sm:$0xff]  ;;  %v209_v21 = vld [vmem:[#allocation8 + $0x88] sm:$0xff] }
  0x4e   :  { %v4851_v19 = vsub.f32 %v195_v3, %v1159_v7  ;;  %v216_v22 = vld [vmem:[#allocation8 + $0xc0] sm:$0xff]  ;;  %v4853_v23 = vpack.c.bf16 %v1163_v10, %v1159_v7  ;;  %v4855_v24 = vsub.f32 %v202_v6, %v1163_v10  ;;  %v4859_v26 = vsub.f32 %v192_v8, %v306_v11  ;;  %v206_v27 = vld [vmem:[#allocation8 + $0x70] sm:$0xff]  ;;  %v213_v32 = vld [vmem:[#allocation8 + $0xa8] sm:$0xff] }
  0x4f   :  { %6681 = vst [vmem:[#allocation15_spill] sm:$0xff] %v4845_v16  ;;  %6682 = vst [vmem:[#allocation16_spill] sm:$0xff] %v4847_v17  ;;  %v4857_v25 = vpack.c.bf16 %v310_v12, %v306_v11  ;;  %3861 = vmatprep.subr.bf16.mxu0 %v4845_v16  ;;  %v4862_v28 = vsub.f32 %v199_v9, %v310_v12  ;;  %v1161_v29 = vand.u32 4294901760, %v194_v13  ;;  %v1165_v30 = vand.u32 4294901760, %v201_v14  ;;  %v208_v37 = vld [vmem:[#allocation8 + $0x80] sm:$0xff]  ;;  %v215_v38 = vld [vmem:[#allocation8 + $0xb8] sm:$0xff] }
  0x50   :  { %6683 = vst [vmem:[#allocation17_spill] sm:$0xff] %v4849_v18  ;;  %6684 = vst [vmem:[#allocation18_spill] sm:$0xff] %v4851_v19  ;;  %v312_v31 = vand.u32 4294901760, %v207_v15  ;;  %4053 = vmatprep.subr.bf16.mxu1 %v4853_v23  ;;  %v316_v33 = vand.u32 4294901760, %v214_v20  ;;  %v1167_v34 = vand.u32 4294901760, %v209_v21  ;;  %v1171_v35 = vand.u32 4294901760, %v216_v22 }
  0x51   :  { %6685 = vst [vmem:[#allocation19_spill] sm:$0xff] %v4853_v23  ;;  %6686 = vst [vmem:[#allocation20_spill] sm:$0xff] %v4855_v24  ;;  %3863 = vmatpush1.bf16.msra.mxu0 %v4857_v25  ;;  %v314_v36 = vand.u32 4294901760, %v206_v27  ;;  %v4866_v39 = vpack.c.bf16 %v1165_v30, %v1161_v29  ;;  %v4868_v40 = vsub.f32 %v194_v13, %v1161_v29  ;;  %v221_v43 = vld [vmem:[#allocation8 + $0xe8] sm:$0xff]  ;;  %v228_v44 = vld [vmem:[#allocation8 + $0x120] sm:$0xff]  ;;  %v318_v52 = vand.u32 4294901760, %v213_v32 }
  0x52   :  { %6687 = vst [vmem:[#allocation21_spill] sm:$0xff] %v4857_v25  ;;  %6688 = vst [vmem:[#allocation22_spill] sm:$0xff] %v4862_v28  ;;  %v4870_v41 = vsub.f32 %v201_v14, %v1165_v30  ;;  %v4872_v42 = vsub.f32 %v207_v15, %v312_v31  ;;  %v223_v45 = vld [vmem:[#allocation8 + $0xf8] sm:$0xff]  ;;  %v4874_v46 = vpack.c.bf16 %v316_v33, %v312_v31  ;;  %v230_v50 = vld [vmem:[#allocation8 + $0x130] sm:$0xff]  ;;  %v1169_v54 = vand.u32 4294901760, %v208_v37 }
  0x53   :  { %6689 = vst [vmem:[#allocation23_spill] sm:$0xff] %v4866_v39  ;;  %v4876_v47 = vsub.f32 %v214_v20, %v316_v33  ;;  %v4878_v48 = vpack.c.bf16 %v1171_v35, %v1167_v34  ;;  %v4880_v49 = vsub.f32 %v209_v21, %v1167_v34  ;;  %4055 = vmatpush1.bf16.msra.mxu1 %v4866_v39  ;;  %v1173_v55 = vand.u32 4294901760, %v215_v38  ;;  %v220_v59 = vld [vmem:[#allocation8 + $0xe0] sm:$0xff]  ;;  %v227_v60 = vld [vmem:[#allocation8 + $0x118] sm:$0xff]  ;;  %v222_v2 = vld [vmem:[#allocation8 + $0xf0] sm:$0xff] }
  0x54   :  { %6690 = vst [vmem:[#allocation24_spill] sm:$0xff] %v4874_v46  ;;  %v4883_v51 = vsub.f32 %v216_v22, %v1171_v35  ;;  %v4885_v53 = vsub.f32 %v206_v27, %v314_v36  ;;  %3865 = vmatprep.subr.bf16.mxu0 %v4874_v46  ;;  %v320_v56 = vand.u32 4294901760, %v221_v43  ;;  %v324_v57 = vand.u32 4294901760, %v228_v44  ;;  %v229_v3 = vld [vmem:[#allocation8 + $0x128] sm:$0xff]  ;;  %v235_v4 = vld [vmem:[#allocation8 + $0x158] sm:$0xff]  ;;  %v242_v9 = vld [vmem:[#allocation8 + $0x190] sm:$0xff] }
  0x55   :  { %6691 = vst [vmem:[#allocation25_spill] sm:$0xff] %v4878_v48  ;;  %4057 = vmatprep.subr.bf16.mxu1 %v4878_v48  ;;  %v1175_v58 = vand.u32 4294901760, %v223_v45  ;;  %v4889_v61 = vpack.c.bf16 %v318_v52, %v314_v36  ;;  %v4891_v62 = vsub.f32 %v213_v32, %v318_v52  ;;  %v4893_v63 = vsub.f32 %v208_v37, %v1169_v54  ;;  %v237_v10 = vld [vmem:[#allocation8 + $0x168] sm:$0xff]  ;;  %v244_v11 = vld [vmem:[#allocation8 + $0x1a0] sm:$0xff]  ;;  %v234_v33 = vld [vmem:[#allocation8 + $0x150] sm:$0xff] }
  0x56   :  { %v1179_v1 = vand.u32 4294901760, %v230_v50  ;;  %v4895_v5 = vpack.c.bf16 %v1173_v55, %v1169_v54  ;;  %v4897_v6 = vsub.f32 %v215_v38, %v1173_v55  ;;  %v4899_v7 = vpack.c.bf16 %v324_v57, %v320_v56  ;;  %v241_v38 = vld [vmem:[#allocation8 + $0x188] sm:$0xff]  ;;  %v255_v0 = vld [vmem:[#allocation8 + $0x1f8] sm:$0xff]  ;;  %v264_v39 = vld [vmem:[#allocation8 + $0x240] sm:$0xff] }
  0x57   :  { %6692 = vst [vmem:[#allocation26_spill] sm:$0xff] %v4889_v61  ;;  %v4901_v8 = vsub.f32 %v221_v43, %v320_v56  ;;  %3867 = vmatpush1.bf16.msra.mxu0 %v4889_v61  ;;  %v4904_v12 = vsub.f32 %v228_v44, %v324_v57  ;;  %v4908_v14 = vsub.f32 %v223_v45, %v1175_v58  ;;  %v322_v20 = vand.u32 4294901760, %v220_v59  ;;  %v236_v43 = vld [vmem:[#allocation8 + $0x160] sm:$0xff]  ;;  %v243_v44 = vld [vmem:[#allocation8 + $0x198] sm:$0xff]  ;;  %v249_v55 = vld [vmem:[#allocation8 + $0x1c8] sm:$0xff] }
  0x58   :  { %6693 = vst [vmem:[#allocation27_spill] sm:$0xff] %v4895_v5  ;;  %6694 = vst [vmem:[#allocation28_spill] sm:$0xff] %v4899_v7  ;;  %v4906_v13 = vpack.c.bf16 %v1179_v1, %v1175_v58  ;;  %v4910_v15 = vsub.f32 %v230_v50, %v1179_v1  ;;  %4059 = vmatpush1.bf16.msra.mxu1 %v4895_v5  ;;  %3869 = vmatprep.subr.bf16.mxu0 %v4899_v7  ;;  %v326_v21 = vand.u32 4294901760, %v227_v60  ;;  %v256_v56 = vld [vmem:[#allocation8 + $0x200] sm:$0xff]  ;;  %v251_v57 = vld [vmem:[#allocation8 + $0x1d8] sm:$0xff] }
  0x59   :  { %v1177_v22 = vand.u32 4294901760, %v222_v2  ;;  %v1181_v27 = vand.u32 4294901760, %v229_v3  ;;  %v328_v29 = vand.u32 4294901760, %v235_v4  ;;  %v332_v30 = vand.u32 4294901760, %v242_v9  ;;  %v265_v48 = vld [vmem:[#allocation8 + $0x248] sm:$0xff]  ;;  %v271_v16 = vld [vmem:[#allocation8 + $0x278] sm:$0xff] }
  0x5a   :  { %6695 = vst [vmem:[#allocation29_spill] sm:$0xff] %v4906_v13  ;;  %4061 = vmatprep.subr.bf16.mxu1 %v4906_v13  ;;  %v1183_v31 = vand.u32 4294901760, %v237_v10  ;;  %v1187_v32 = vand.u32 4294901760, %v244_v11  ;;  %v4915_v34 = vpack.c.bf16 %v326_v21, %v322_v20  ;;  %v4917_v35 = vsub.f32 %v220_v59, %v322_v20  ;;  %v270_v13 = vld [vmem:[#allocation8 + $0x270] sm:$0xff] }
  0x5b   :  { %v4919_v36 = vsub.f32 %v227_v60, %v326_v21  ;;  %v4921_v37 = vpack.c.bf16 %v1181_v27, %v1177_v22  ;;  %v4923_v45 = vsub.f32 %v222_v2, %v1177_v22  ;;  %v4925_v50 = vsub.f32 %v229_v3, %v1181_v27  ;;  %v258_v21 = vld [vmem:[#allocation8 + $0x210] sm:$0xff] }
  0x5c   :  { %6696 = vst [vmem:[#allocation30_spill] sm:$0xff] %v4915_v34  ;;  %v4927_v52 = vpack.c.bf16 %v332_v30, %v328_v29  ;;  %v4929_v54 = vsub.f32 %v235_v4, %v328_v29  ;;  %3871 = vmatpush1.bf16.msra.mxu0 %v4915_v34  ;;  %v4933_v58 = vsub.f32 %v242_v9, %v332_v30  ;;  %v330_v1 = vand.u32 4294901760, %v234_v33  ;;  %v248_v30 = vld [vmem:[#allocation8 + $0x1c0] sm:$0xff]  ;;  %v263_v34 = vld [vmem:[#allocation8 + $0x238] sm:$0xff] }
  0x5d   :  { %6697 = vst [vmem:[#allocation31_spill] sm:$0xff] %v4921_v37  ;;  %4063 = vmatpush1.bf16.msra.mxu1 %v4921_v37  ;;  %v4935_v59 = vpack.c.bf16 %v1187_v32, %v1183_v31  ;;  %v4937_v60 = vsub.f32 %v237_v10, %v1183_v31  ;;  %v4940_v2 = vsub.f32 %v244_v11, %v1187_v32  ;;  %v334_v3 = vand.u32 4294901760, %v241_v38  ;;  %v250_v10 = vld [vmem:[#allocation8 + $0x1d0] sm:$0xff] }
  0x5e   :  { %6698 = vst [vmem:[#allocation32_spill] sm:$0xff] %v4927_v52  ;;  %3873 = vmatprep.subr.bf16.mxu0 %v4927_v52  ;;  %v1185_v4 = vand.u32 4294901760, %v236_v43  ;;  %v1189_v20 = vand.u32 4294901760, %v243_v44  ;;  %v4943_v22 = vsub.f32 %v234_v33, %v330_v1  ;;  %v336_v27 = vand.u32 4294901760, %v249_v55  ;;  %v257_v52 = vld [vmem:[#allocation8 + $0x208] sm:$0xff] }
  0x5f   :  { %6699 = vst [vmem:[#allocation33_spill] sm:$0xff] %v4935_v59  ;;  %4065 = vmatprep.subr.bf16.mxu1 %v4935_v59  ;;  %v340_v9 = vand.u32 4294901760, %v256_v56  ;;  %v1191_v29 = vand.u32 4294901760, %v251_v57  ;;  %v4945_v31 = vpack.c.bf16 %v334_v3, %v330_v1  ;;  %v4947_v37 = vsub.f32 %v241_v38, %v334_v3 }
  0x60   :  { %v4949_v11 = vpack.c.bf16 %v1189_v20, %v1185_v4  ;;  %v4951_v32 = vsub.f32 %v236_v43, %v1185_v4  ;;  %v4953_v59 = vsub.f32 %v243_v44, %v1189_v20  ;;  %v4957_v5 = vsub.f32 %v249_v55, %v336_v27  ;;  %v272_v55 = vld [vmem:[#allocation8 + $0x280] sm:$0xff] }
  0x61   :  { %6700 = vst [vmem:[#allocation34_spill] sm:$0xff] %v4945_v31  ;;  %v4955_v33 = vpack.c.bf16 %v340_v9, %v336_v27  ;;  %v4959_v7 = vsub.f32 %v256_v56, %v340_v9  ;;  %3875 = vmatpush1.bf16.msra.mxu0 %v4945_v31  ;;  %v1195_v38 = vand.u32 4294901760, %v258_v21  ;;  %v4963_v1 = vsub.f32 %v251_v57, %v1191_v29  ;;  %v262_v57 = vld [vmem:[#allocation8 + $0x230] sm:$0xff]  ;;  %v269_v31 = vld [vmem:[#allocation8 + $0x268] sm:$0xff] }
  0x62   :  { %6701 = vst [vmem:[#allocation35_spill] sm:$0xff] %v4949_v11  ;;  %6702 = vst [vmem:[#allocation36_spill] sm:$0xff] %v4951_v32  ;;  %4067 = vmatpush1.bf16.msra.mxu1 %v4949_v11  ;;  %v338_v43 = vand.u32 4294901760, %v248_v30  ;;  %v342_v3 = vand.u32 4294901760, %v255_v0  ;;  %v1193_v4 = vand.u32 4294901760, %v250_v10  ;;  %v1197_v44 = vand.u32 4294901760, %v257_v52 }
  0x63   :  { %6703 = vst [vmem:[#allocation37_spill] sm:$0xff] %v4953_v59  ;;  %6704 = vst [vmem:[#allocation38_spill] sm:$0xff] %v4955_v33  ;;  %3877 = vmatprep.subr.bf16.mxu0 %v4955_v33  ;;  %v344_v20 = vand.u32 4294901760, %v263_v34  ;;  %v348_v61 = vand.u32 4294901760, %v270_v13  ;;  %v4966_v27 = vpack.c.bf16 %v1195_v38, %v1191_v29  ;;  %v4968_v56 = vsub.f32 %v258_v21, %v1195_v38  ;;  %v277_v29 = vld [vmem:[#allocation8 + $0x2a8] sm:$0xff] }
  0x64   :  { %6705 = vst [vmem:[#allocation39_spill] sm:$0xff] %v4957_v5  ;;  %6706 = vst [vmem:[#allocation40_spill] sm:$0xff] %v4959_v7  ;;  %v4970_v9 = vpack.c.bf16 %v342_v3, %v338_v43  ;;  %v4972_v11 = vsub.f32 %v248_v30, %v338_v43  ;;  %v4974_v46 = vsub.f32 %v255_v0, %v342_v3  ;;  %v1199_v0 = vand.u32 4294901760, %v265_v48 }
  0x65   :  { %6707 = vst [vmem:[#allocation41_spill] sm:$0xff] %v4963_v1  ;;  %6708 = vst [vmem:[#allocation42_spill] sm:$0xff] %v4966_v27  ;;  %v4976_v33 = vpack.c.bf16 %v1197_v44, %v1193_v4  ;;  %v4978_v25 = vsub.f32 %v250_v10, %v1193_v4  ;;  %v4980_v23 = vsub.f32 %v257_v52, %v1197_v44  ;;  %v284_v1 = vld [vmem:[#allocation8 + $0x2e0] sm:$0xff]  ;;  %4069 = vmatprep.subr.bf16.mxu1 %v4966_v27 }
  0x66   :  { %6709 = vst [vmem:[#allocation43_spill] sm:$0xff] %v4968_v56  ;;  %6710 = vst [vmem:[#allocation44_spill] sm:$0xff] %v4970_v9  ;;  %3879 = vmatpush1.bf16.msra.mxu0 %v4970_v9  ;;  %v4984_v21 = vpack.c.bf16 %v348_v61, %v344_v20  ;;  %v4986_v30 = vsub.f32 %v263_v34, %v344_v20  ;;  %v4988_v38 = vsub.f32 %v270_v13, %v348_v61  ;;  %v298_v56 = vld [vmem:[#allocation8 + $0x350] sm:$0xff] }
  0x67   :  { %6711 = vst [vmem:[#allocation45_spill] sm:$0xff] %v4972_v11  ;;  %6712 = vst [vmem:[#allocation46_spill] sm:$0xff] %v4974_v46  ;;  %4071 = vmatpush1.bf16.msra.mxu1 %v4976_v33  ;;  %v1203_v10 = vand.u32 4294901760, %v272_v55  ;;  %v346_v43 = vand.u32 4294901760, %v262_v57  ;;  %v350_v52 = vand.u32 4294901760, %v269_v31  ;;  %v1201_v3 = vand.u32 4294901760, %v264_v39 }
  0x68   :  { %6713 = vst [vmem:[#allocation47_spill] sm:$0xff] %v4976_v33  ;;  %6714 = vst [vmem:[#allocation48_spill] sm:$0xff] %v4978_v25  ;;  %3881 = vmatprep.subr.bf16.mxu0 %v4984_v21  ;;  %v4992_v4 = vsub.f32 %v265_v48, %v1199_v0  ;;  %v1205_v44 = vand.u32 4294901760, %v271_v16  ;;  %v352_v27 = vand.u32 4294901760, %v277_v29  ;;  %v356_v9 = vand.u32 4294901760, %v284_v1  ;;  %v286_v25 = vld [vmem:[#allocation8 + $0x2f0] sm:$0xff] }
  0x69   :  { %6715 = vst [vmem:[#allocation49_spill] sm:$0xff] %v4980_v23  ;;  %6716 = vst [vmem:[#allocation50_spill] sm:$0xff] %v4984_v21  ;;  %v279_v23 = vld [vmem:[#allocation8 + $0x2b8] sm:$0xff]  ;;  %v4994_v34 = vpack.c.bf16 %v1203_v10, %v1199_v0  ;;  %v4996_v61 = vsub.f32 %v272_v55, %v1203_v10  ;;  %v4998_v13 = vpack.c.bf16 %v350_v52, %v346_v43  ;;  %v276_v33 = vld [vmem:[#allocation8 + $0x2a0] sm:$0xff] }
  0x6a   :  { %6717 = vst [vmem:[#allocation51_spill] sm:$0xff] %v4986_v30  ;;  %6718 = vst [vmem:[#allocation52_spill] sm:$0xff] %v4988_v38  ;;  %v5000_v20 = vsub.f32 %v262_v57, %v346_v43  ;;  %v283_v38 = vld [vmem:[#allocation8 + $0x2d8] sm:$0xff]  ;;  %v278_v30 = vld [vmem:[#allocation8 + $0x2b0] sm:$0xff]  ;;  %v5002_v46 = vsub.f32 %v269_v31, %v350_v52  ;;  %v5004_v48 = vpack.c.bf16 %v1205_v44, %v1201_v3  ;;  %v1207_v31 = vand.u32 4294901760, %v279_v23 }
  0x6b   :  { %6719 = vst [vmem:[#allocation53_spill] sm:$0xff] %v4992_v4  ;;  %6720 = vst [vmem:[#allocation54_spill] sm:$0xff] %v4994_v34  ;;  %v5006_v21 = vsub.f32 %v264_v39, %v1201_v3  ;;  %v5008_v4 = vsub.f32 %v271_v16, %v1205_v44  ;;  %v285_v11 = vld [vmem:[#allocation8 + $0x2e8] sm:$0xff]  ;;  %v291_v0 = vld [vmem:[#allocation8 + $0x318] sm:$0xff]  ;;  %4073 = vmatprep.subr.bf16.mxu1 %v4994_v34  ;;  %3883 = vmatpush1.bf16.msra.mxu0 %v4998_v13  ;;  %v1211_v39 = vand.u32 4294901760, %v286_v25 }
  0x6c   :  { %6721 = vst [vmem:[#allocation55_spill] sm:$0xff] %v4996_v61  ;;  %6722 = vst [vmem:[#allocation56_spill] sm:$0xff] %v4998_v13  ;;  %v5012_v55 = vpack.c.bf16 %v356_v9, %v352_v27  ;;  %v5014_v57 = vsub.f32 %v277_v29, %v352_v27  ;;  %v5016_v10 = vsub.f32 %v284_v1, %v356_v9  ;;  %4075 = vmatpush1.bf16.msra.mxu1 %v5004_v48 }
  0x6d   :  { %6723 = vst [vmem:[#allocation57_spill] sm:$0xff] %v5000_v20  ;;  %6724 = vst [vmem:[#allocation58_spill] sm:$0xff] %v5002_v46  ;;  %v354_v43 = vand.u32 4294901760, %v276_v33  ;;  %v358_v16 = vand.u32 4294901760, %v283_v38  ;;  %v1209_v52 = vand.u32 4294901760, %v278_v30  ;;  %v5020_v3 = vsub.f32 %v279_v23, %v1207_v31  ;;  %v299_v20 = vld [vmem:[#allocation8 + $0x358] sm:$0xff] }
  0x6e   :  { %6725 = vst [vmem:[#allocation59_spill] sm:$0xff] %v5004_v48  ;;  %6726 = vst [vmem:[#allocation60_spill] sm:$0xff] %v5006_v21  ;;  %3885 = vmatprep.subr.bf16.mxu0 %v5012_v55  ;;  %v1213_v44 = vand.u32 4294901760, %v285_v11  ;;  %v360_v34 = vand.u32 4294901760, %v291_v0  ;;  %v364_v13 = vand.u32 4294901760, %v298_v56  ;;  %v300_v21 = vld [vmem:[#allocation8 + $0x360] sm:$0xff]  ;;  %v5022_v27 = vpack.c.bf16 %v1211_v39, %v1207_v31 }
  0x6f   :  { %6727 = vst [vmem:[#allocation61_spill] sm:$0xff] %v5008_v4  ;;  %6728 = vst [vmem:[#allocation62_spill] sm:$0xff] %v5012_v55  ;;  %v293_v4 = vld [vmem:[#allocation8 + $0x328] sm:$0xff]  ;;  %v5024_v1 = vsub.f32 %v286_v25, %v1211_v39  ;;  %v5026_v9 = vpack.c.bf16 %v358_v16, %v354_v43  ;;  %v5028_v29 = vsub.f32 %v276_v33, %v354_v43  ;;  %v290_v48 = vld [vmem:[#allocation8 + $0x310] sm:$0xff] }
  0x70   :  { %6729 = vst [vmem:[#allocation63_spill] sm:$0xff] %v5014_v57  ;;  %6730 = vst [vmem:[#allocation64_spill] sm:$0xff] %v5016_v10  ;;  %v297_v10 = vld [vmem:[#allocation8 + $0x348] sm:$0xff]  ;;  %v292_v57 = vld [vmem:[#allocation8 + $0x320] sm:$0xff]  ;;  %v5030_v46 = vsub.f32 %v283_v38, %v358_v16  ;;  %v5032_v23 = vpack.c.bf16 %v1213_v44, %v1209_v52  ;;  %v5034_v55 = vsub.f32 %v278_v30, %v1209_v52  ;;  %4077 = vmatprep.subr.bf16.mxu1 %v5022_v27 }
  0x71   :  { %6731 = vst [vmem:[#allocation65_spill] sm:$0xff] %v5020_v3  ;;  %6732 = vst [vmem:[#allocation66_spill] sm:$0xff] %v5022_v27  ;;  %v5036_v3 = vsub.f32 %v285_v11, %v1213_v44  ;;  %3887 = vmatpush1.bf16.msra.mxu0 %v5026_v9  ;;  %v5040_v25 = vpack.c.bf16 %v364_v13, %v360_v34  ;;  %v5042_v33 = vsub.f32 %v291_v0, %v360_v34 }
  0x72   :  { %6733 = vst [vmem:[#allocation67_spill] sm:$0xff] %v5026_v9  ;;  %6734 = vst [vmem:[#allocation68_spill] sm:$0xff] %v5032_v23  ;;  %v5044_v31 = vsub.f32 %v298_v56, %v364_v13  ;;  %v1215_v39 = vand.u32 4294901760, %v293_v4  ;;  %4079 = vmatpush1.bf16.msra.mxu1 %v5032_v23  ;;  %v1219_v38 = vand.u32 4294901760, %v300_v21  ;;  %v362_v43 = vand.u32 4294901760, %v290_v48 }
  0x73   :  { %6735 = vst [vmem:[#allocation69_spill] sm:$0xff] %v5040_v25  ;;  %v366_v30 = vand.u32 4294901760, %v297_v10  ;;  %v1217_v16 = vand.u32 4294901760, %v292_v57  ;;  %3889 = vmatprep.subr.bf16.mxu0 %v5040_v25  ;;  %v1221_v52 = vand.u32 4294901760, %v299_v20  ;;  %v6459_v9 = vand.u32 4294901760, %v4849_v18 }
  0x74   :  { %6736 = vst [vmem:[#allocation70_spill] sm:$0xff] %v5044_v31  ;;  %v5048_v11 = vsub.f32 %v293_v4, %v1215_v39  ;;  %v5052_v34 = vpack.c.bf16 %v1219_v38, %v1215_v39  ;;  %v5054_v56 = vsub.f32 %v300_v21, %v1219_v38  ;;  %v5058_v0 = vsub.f32 %v290_v48, %v362_v43  ;;  %v191_v23 = vld [vmem:[%s6380_s3] sm:$0x3f]  ;;  %s4757_s3 = smov [#allocation10]  }
  0x75   :  { %v5056_v13 = vpack.c.bf16 %v366_v30, %v362_v43  ;;  %v5063_v25 = vsub.f32 %v297_v10, %v366_v30  ;;  %v5065_v4 = vpack.c.bf16 %v1221_v52, %v1217_v16  ;;  %v5067_v27 = vsub.f32 %v292_v57, %v1217_v16  ;;  %s3530_s16 = sshll.u32 %s4757_s3, 4  ;;  %s3531_s16 = int_to_ptr.vmem [resolvable:$true] %s3530_s16 }
  0x76   :  { %6737 = vst [vmem:[#allocation71_spill] sm:$0xff] %v5048_v11  ;;  %6738 = vst [vmem:[#allocation72_spill] sm:$0xff] %v5052_v34  ;;  %v5069_v44 = vsub.f32 %v299_v20, %v1221_v52  ;;  %4081 = vmatprep.subr.bf16.mxu1 %v5052_v34  ;;  %v6746_v21 = vand.u32 4294901760, %v4847_v17  ;;  %v427_v39 = vsub.f32 %v4849_v18, %v6459_v9  ;;  %v6464_v10 = vand.u32 4294901760, %v4851_v19  ;;  %s4718_s17 = scalar_lea.vmem %s3531_s16, 896  ;;  %p4723_p5 = scmp.lt.s32.totalorder %s3531_s16, %s3531_s16 }
  0x77   :  { %6739 = vst [vmem:[#allocation73_spill] sm:$0xff] %v5054_v56  ;;  %6740 = vst [vmem:[#allocation74_spill] sm:$0xff] %v5056_v13  ;;  %3891 = vmatpush1.bf16.msra.mxu0 %v5056_v13  ;;  %v6469_v38 = vand.u32 4294901760, %v4855_v24  ;;  %4083 = vmatpush1.bf16.msra.mxu1 %v5065_v4  ;;  %v5082_v20 = vand.u32 4294901760, %v191_v23  ;;  %v6476_v57 = vand.u32 4294901760, %v4859_v26  ;;  %v6477_v43 = vand.u32 4294901760, %v4862_v28  ;;  %p4719_p4 = scmp.ne.s32.totalorder %s3531_s16, %s4718_s17  ;;  %p4724_p6 = scmp.lt.s32.totalorder %s4718_s17, %s4718_s17 }
  0x78   :  { %6741 = vst [vmem:[#allocation75_spill] sm:$0xff] %v5058_v0  ;;  %6742 = vst [vmem:[#allocation76_spill] sm:$0xff] %v5063_v25  ;;  %v415_v48 = vsub.f32 %v4847_v17, %v6746_v21  ;;  %v6483_v30 = vand.u32 4294901760, %v4868_v40  ;;  %v428_v52 = vand.u32 4294901760, %v427_v39  ;;  %v1270_v21 = vsub.f32 %v4851_v19, %v6464_v10 }
  0x79   :  { %6743 = vst [vmem:[#allocation77_spill] sm:$0xff] %v5065_v4  ;;  %6744 = vst [vmem:[#allocation78_spill] sm:$0xff] %v5067_v27  ;;  %v1282_v9 = vsub.f32 %v4855_v24, %v6469_v38  ;;  %v5094_v4 = vsub.f32 %v191_v23, %v5082_v20  ;;  %v421_v13 = vsub.f32 %v4859_v26, %v6476_v57  ;;  %v6481_v38 = vand.u32 4294901760, %v4870_v41  ;;  %p4725_p7 = por %p4724_p6, %p4723_p5 }
  0x7a   :  { %6745 = vst [vmem:[#allocation79_spill] sm:$0xff] %v5069_v44  ;;  %6747 = vst [vmem:[#allocation80_spill] sm:$0xff] %v5082_v20  ;;  %v416_v16 = vand.u32 4294901760, %v415_v48  ;;  %v433_v48 = vsub.f32 %v4862_v28, %v6477_v43  ;;  %v1276_v39 = vsub.f32 %v4868_v40, %v6483_v30  ;;  %v1271_v34 = vand.u32 4294901760, %v1270_v21 }
  0x7b   :  { %6748 = vst [vmem:[#allocation81_spill] sm:$0xff] %v5094_v4  ;;  %v1283_v19 = vand.u32 4294901760, %v1282_v9  ;;  %v5107_v23 = vand.u32 4294901760, %v5094_v4  ;;  %v422_v20 = vand.u32 4294901760, %v421_v13  ;;  %v1288_v43 = vsub.f32 %v4870_v41, %v6481_v38  ;;  %p4726_p8 = pnand %p4725_p7, %p4719_p4 }
  0x7c   :  { %v3892_v10 = vpack.c.bf16 %v428_v52, %v416_v16  ;;  %v434_v24 = vand.u32 4294901760, %v433_v48  ;;  %v1277_v18 = vand.u32 4294901760, %v1276_v39  ;;  %v6480_v28 = vand.u32 4294901760, %v4872_v42 }
  0x7d   :  { %6749 = vst [vmem:[#allocation82_spill] sm:$0xff] %v5107_v23  ;;  %v4084_v57 = vpack.c.bf16 %v1283_v19, %v1271_v34  ;;  %v6482_v16 = vand.u32 4294901760, %v4876_v47  ;;  %v404_v9 = vsub.f32 %v5094_v4, %v5107_v23  ;;  %v6484_v21 = vand.u32 4294901760, %v4880_v49 }
  0x7e   :  { %3893 = vmatprep.subr.bf16.mxu0 %v3892_v10  ;;  %v3894_v52 = vpack.c.bf16 %v434_v24, %v422_v20  ;;  %v6485_v13 = vand.u32 4294901760, %v4883_v51  ;;  %v1289_v48 = vand.u32 4294901760, %v1288_v43  ;;  %v439_v19 = vsub.f32 %v4872_v42, %v6480_v28 }
  0x7f   :  { %4085 = vmatprep.subr.bf16.mxu1 %v4084_v57  ;;  %v451_v34 = vsub.f32 %v4876_v47, %v6482_v16  ;;  %v6486_v10 = vand.u32 4294901760, %v4885_v53  ;;  %v5125_v39 = vand.u32 4294901760, %v404_v9  ;;  %v1294_v24 = vsub.f32 %v4880_v49, %v6484_v21 }
  0x80   :  { %v1306_v20 = vsub.f32 %v4883_v51, %v6485_v13  ;;  %v6495_v57 = vand.u32 4294901760, %v4891_v62  ;;  %v4086_v43 = vpack.c.bf16 %v1289_v48, %v1277_v18  ;;  %v440_v28 = vand.u32 4294901760, %v439_v19 }
  0x81   :  { %6750 = vst [vmem:[#allocation83_spill] sm:$0xff] %v5125_v39  ;;  %v452_v38 = vand.u32 4294901760, %v451_v34  ;;  %v445_v16 = vsub.f32 %v4885_v53, %v6486_v10  ;;  %406 = vmatmul.mubr.f32.vlgmr.msra.gmra.mrb[0].mxu0 %v5125_v39  ;;  %1261 = vmatmul.mubr.f32.vlgmr.msra.gmra.mrb[0].mxu1 %v5125_v39  ;;  %v1295_v9 = vand.u32 4294901760, %v1294_v24  ;;  %v6491_v13 = vand.u32 4294901760, %v4893_v63 }
  0x82   :  { %v1307_v30 = vand.u32 4294901760, %v1306_v20  ;;  %v457_v21 = vsub.f32 %v4891_v62, %v6495_v57  ;;  %3895 = vmatpush1.bf16.msra.mxu0 %v3894_v52  ;;  %4087 = vmatpush1.bf16.msra.mxu1 %v4086_v43  ;;  %v6492_v19 = vand.u32 4294901760, %v4897_v6  ;;  %v6493_v34 = vand.u32 4294901760, %v4901_v8 }
  0x83   :  { %v3896_v18 = vpack.c.bf16 %v452_v38, %v440_v28  ;;  %v446_v48 = vand.u32 4294901760, %v445_v16  ;;  %v1300_v24 = vsub.f32 %v4893_v63, %v6491_v13  ;;  %v6494_v20 = vand.u32 4294901760, %v4904_v12 }
  0x84   :  { %v4088_v10 = vpack.c.bf16 %v1307_v30, %v1295_v9  ;;  %v458_v23 = vand.u32 4294901760, %v457_v21  ;;  %v6751_v39 = vmov 0.0   ;;  %v1312_v28 = vsub.f32 %v4897_v6, %v6492_v19 }
  0x85   :  { %636 = vmatprep.mubr.f32.mxu0 %v6751_v39  ;;  %1491 = vmatprep.mubr.f32.mxu1 %v6751_v39  ;;  %v463_v38 = vsub.f32 %v4901_v8, %v6493_v34  ;;  %v6496_v30 = vand.u32 4294901760, %v4908_v14  ;;  %v6507_v16 = vand.u32 4294901760, %v4910_v15  ;;  %v1301_v21 = vand.u32 4294901760, %v1300_v24 }
  0x86   :  { %3897 = vmatprep.subr.bf16.mxu0 %v3896_v18  ;;  %4089 = vmatprep.subr.bf16.mxu1 %v4088_v10  ;;  %v3898_v52 = vpack.c.bf16 %v458_v23, %v446_v48  ;;  %v475_v43 = vsub.f32 %v4904_v12, %v6494_v20  ;;  %v6499_v9 = vand.u32 4294901760, %v4917_v35  ;;  %v1313_v18 = vand.u32 4294901760, %v1312_v28 }
  0x87   :  { %v464_v13 = vand.u32 4294901760, %v463_v38  ;;  %v1318_v19 = vsub.f32 %v4908_v14, %v6496_v30  ;;  %v1330_v34 = vsub.f32 %v4910_v15, %v6507_v16  ;;  %v6500_v48 = vand.u32 4294901760, %v4919_v36 }
  0x88   :  { %3899 = vmatpush1.bf16.msra.mxu0 %v3898_v52  ;;  %v476_v10 = vand.u32 4294901760, %v475_v43  ;;  %v469_v23 = vsub.f32 %v4917_v35, %v6499_v9  ;;  %v6504_v24 = vand.u32 4294901760, %v4923_v45  ;;  %v4090_v28 = vpack.c.bf16 %v1313_v18, %v1301_v21 }
  0x89   :  { %v1319_v38 = vand.u32 4294901760, %v1318_v19  ;;  %v1331_v20 = vand.u32 4294901760, %v1330_v34  ;;  %v6501_v57 = vand.u32 4294901760, %v4925_v50  ;;  %v481_v52 = vsub.f32 %v4919_v36, %v6500_v48 }
  0x8a   :  { %v3900_v30 = vpack.c.bf16 %v476_v10, %v464_v13  ;;  %v470_v4 = vand.u32 4294901760, %v469_v23  ;;  %v1324_v43 = vsub.f32 %v4923_v45, %v6504_v24  ;;  %4091 = vmatpush1.bf16.msra.mxu1 %v4090_v28  ;;  %v6502_v19 = vand.u32 4294901760, %v4929_v54 }
  0x8b   :  { %v4092_v9 = vpack.c.bf16 %v1331_v20, %v1319_v38  ;;  %v1336_v21 = vsub.f32 %v4925_v50, %v6501_v57  ;;  %v6503_v34 = vand.u32 4294901760, %v4933_v58  ;;  %v482_v13 = vand.u32 4294901760, %v481_v52 }
  0x8c   :  { %3901 = vmatprep.subr.bf16.mxu0 %v3900_v30  ;;  %v1325_v18 = vand.u32 4294901760, %v1324_v43  ;;  %v6505_v10 = vand.u32 4294901760, %v4937_v60  ;;  %v6506_v23 = vand.u32 4294901760, %v4940_v2  ;;  %v487_v20 = vsub.f32 %v4929_v54, %v6502_v19 }
  0x8d   :  { %4093 = vmatprep.subr.bf16.mxu1 %v4092_v9  ;;  %v1337_v48 = vand.u32 4294901760, %v1336_v21  ;;  %v499_v28 = vsub.f32 %v4933_v58, %v6503_v34  ;;  %v6510_v38 = vand.u32 4294901760, %v4943_v22  ;;  %v3902_v57 = vpack.c.bf16 %v482_v13, %v470_v4 }
  0x8e   :  { %v1342_v30 = vsub.f32 %v4937_v60, %v6505_v10  ;;  %v1354_v9 = vsub.f32 %v4940_v2, %v6506_v23  ;;  %v6509_v52 = vand.u32 4294901760, %v4947_v37  ;;  %v488_v21 = vand.u32 4294901760, %v487_v20 }
  0x8f   :  { %v4094_v43 = vpack.c.bf16 %v1337_v48, %v1325_v18  ;;  %v500_v19 = vand.u32 4294901760, %v499_v28  ;;  %v493_v34 = vsub.f32 %v4943_v22, %v6510_v38  ;;  %3903 = vmatpush1.bf16.msra.mxu0 %v3902_v57  ;;  %v6508_v10 = vand.u32 4294901760, %v4951_v32 }
  0x90   :  { %v1343_v24 = vand.u32 4294901760, %v1342_v30  ;;  %v1355_v4 = vand.u32 4294901760, %v1354_v9  ;;  %v505_v13 = vsub.f32 %v4947_v37, %v6509_v52  ;;  %v6513_v48 = vand.u32 4294901760, %v4953_v59 }
  0x91   :  { %4095 = vmatpush1.bf16.msra.mxu1 %v4094_v43  ;;  %v3904_v23 = vpack.c.bf16 %v500_v19, %v488_v21  ;;  %v494_v16 = vand.u32 4294901760, %v493_v34  ;;  %v6514_v18 = vand.u32 4294901760, %v4957_v5  ;;  %v1348_v57 = vsub.f32 %v4951_v32, %v6508_v10  ;;  %v6752_v34 = vld [vmem:[#allocation41_spill] sm:$0xff]  ;;  %v6753_v21 = vld [vmem:[#allocation43_spill] sm:$0xff] }
  0x92   :  { %v4096_v20 = vpack.c.bf16 %v1355_v4, %v1343_v24  ;;  %v506_v28 = vand.u32 4294901760, %v505_v13  ;;  %v6515_v30 = vand.u32 4294901760, %v4959_v7  ;;  %v1360_v9 = vsub.f32 %v4953_v59, %v6513_v48 }
  0x93   :  { %3905 = vmatprep.subr.bf16.mxu0 %v3904_v23  ;;  %v511_v19 = vsub.f32 %v4957_v5, %v6514_v18  ;;  %v6523_v43 = vand.u32 4294901760, %v6752_v34  ;;  %v6526_v24 = vand.u32 4294901760, %v6753_v21  ;;  %v1349_v13 = vand.u32 4294901760, %v1348_v57  ;;  %v6754_v23 = vld [vmem:[#allocation45_spill] sm:$0xff] }
  0x94   :  { %4097 = vmatprep.subr.bf16.mxu1 %v4096_v20  ;;  %v3906_v4 = vpack.c.bf16 %v506_v28, %v494_v16  ;;  %v523_v10 = vsub.f32 %v4959_v7, %v6515_v30  ;;  %v6525_v52 = vand.u32 4294901760, %v6754_v23  ;;  %v1361_v38 = vand.u32 4294901760, %v1360_v9  ;;  %v6755_v28 = vld [vmem:[#allocation46_spill] sm:$0xff]  ;;  %v6756_v30 = vld [vmem:[#allocation48_spill] sm:$0xff]  ;;  %v6757_v7 = vld [vmem:[#allocation49_spill] sm:$0xff] }
  0x95   :  { %v512_v32 = vand.u32 4294901760, %v511_v19  ;;  %v1366_v48 = vsub.f32 %v6752_v34, %v6523_v43  ;;  %v1378_v18 = vsub.f32 %v6753_v21, %v6526_v24  ;;  %v6528_v57 = vand.u32 4294901760, %v6755_v28 }
  0x96   :  { %3907 = vmatpush1.bf16.msra.mxu0 %v3906_v4  ;;  %v524_v20 = vand.u32 4294901760, %v523_v10  ;;  %v517_v16 = vsub.f32 %v6754_v23, %v6525_v52  ;;  %v6531_v59 = vand.u32 4294901760, %v6756_v30  ;;  %v4098_v9 = vpack.c.bf16 %v1361_v38, %v1349_v13  ;;  %v6759_v13 = vld [vmem:[#allocation52_spill] sm:$0xff] }
  0x97   :  { %v1367_v19 = vand.u32 4294901760, %v1366_v48  ;;  %v1379_v39 = vand.u32 4294901760, %v1378_v18  ;;  %v6530_v5 = vand.u32 4294901760, %v6757_v7  ;;  %v529_v4 = vsub.f32 %v6755_v28, %v6528_v57  ;;  %v6758_v48 = vld [vmem:[#allocation51_spill] sm:$0xff] }
  0x98   :  { %v3908_v43 = vpack.c.bf16 %v524_v20, %v512_v32  ;;  %v518_v34 = vand.u32 4294901760, %v517_v16  ;;  %v1372_v10 = vsub.f32 %v6756_v30, %v6531_v59  ;;  %4099 = vmatpush1.bf16.msra.mxu1 %v4098_v9  ;;  %v6533_v18 = vand.u32 4294901760, %v6758_v48  ;;  %v6760_v16 = vld [vmem:[#allocation53_spill] sm:$0xff] }
  0x99   :  { %v4100_v52 = vpack.c.bf16 %v1379_v39, %v1367_v19  ;;  %v1384_v38 = vsub.f32 %v6757_v7, %v6530_v5  ;;  %v6534_v24 = vand.u32 4294901760, %v6759_v13  ;;  %v530_v32 = vand.u32 4294901760, %v529_v4  ;;  %v6761_v19 = vld [vmem:[#allocation57_spill] sm:$0xff]  ;;  %v6762_v4 = vld [vmem:[#allocation58_spill] sm:$0xff] }
  0x9a   :  { %3909 = vmatprep.subr.bf16.mxu0 %v3908_v43  ;;  %v1373_v20 = vand.u32 4294901760, %v1372_v10  ;;  %v6536_v23 = vand.u32 4294901760, %v6760_v16  ;;  %v6538_v57 = vand.u32 4294901760, %v4996_v61  ;;  %v535_v39 = vsub.f32 %v6758_v48, %v6533_v18  ;;  %v6764_v48 = vld [vmem:[#allocation61_spill] sm:$0xff] }
  0x9b   :  { %4101 = vmatprep.subr.bf16.mxu1 %v4100_v52  ;;  %v1385_v28 = vand.u32 4294901760, %v1384_v38  ;;  %v547_v9 = vsub.f32 %v6759_v13, %v6534_v24  ;;  %v6545_v5 = vand.u32 4294901760, %v6761_v19  ;;  %v3910_v59 = vpack.c.bf16 %v530_v32, %v518_v34 }
  0x9c   :  { %v1390_v43 = vsub.f32 %v6760_v16, %v6536_v23  ;;  %v1402_v52 = vsub.f32 %v4996_v61, %v6538_v57  ;;  %v6543_v10 = vand.u32 4294901760, %v6762_v4  ;;  %v536_v7 = vand.u32 4294901760, %v535_v39  ;;  %v6763_v23 = vld [vmem:[#allocation60_spill] sm:$0xff] }
  0x9d   :  { %v4102_v38 = vpack.c.bf16 %v1385_v28, %v1373_v20  ;;  %v548_v18 = vand.u32 4294901760, %v547_v9  ;;  %v541_v24 = vsub.f32 %v6761_v19, %v6545_v5  ;;  %3911 = vmatpush1.bf16.msra.mxu0 %v3910_v59  ;;  %v6544_v16 = vand.u32 4294901760, %v6763_v23  ;;  %v6765_v20 = vld [vmem:[#allocation63_spill] sm:$0xff] }
  0x9e   :  { %v1391_v13 = vand.u32 4294901760, %v1390_v43  ;;  %v1403_v34 = vand.u32 4294901760, %v1402_v52  ;;  %v553_v32 = vsub.f32 %v6762_v4, %v6543_v10  ;;  %v6546_v28 = vand.u32 4294901760, %v6764_v48  ;;  %v6766_v43 = vld [vmem:[#allocation64_spill] sm:$0xff] }
  0x9f   :  { %4103 = vmatpush1.bf16.msra.mxu1 %v4102_v38  ;;  %v3912_v57 = vpack.c.bf16 %v548_v18, %v536_v7  ;;  %v542_v61 = vand.u32 4294901760, %v541_v24  ;;  %v6547_v39 = vand.u32 4294901760, %v6765_v20  ;;  %v1396_v59 = vsub.f32 %v6763_v23, %v6544_v16  ;;  %v6767_v24 = vld [vmem:[#allocation65_spill] sm:$0xff] }
  0xa0   :  { %v4104_v9 = vpack.c.bf16 %v1403_v34, %v1391_v13  ;;  %v554_v30 = vand.u32 4294901760, %v553_v32  ;;  %v6548_v52 = vand.u32 4294901760, %v6766_v43  ;;  %v1408_v10 = vsub.f32 %v6764_v48, %v6546_v28 }
  0xa1   :  { %3913 = vmatprep.subr.bf16.mxu0 %v3912_v57  ;;  %v559_v7 = vsub.f32 %v6765_v20, %v6547_v39  ;;  %v6550_v18 = vand.u32 4294901760, %v6767_v24  ;;  %v6560_v13 = vand.u32 4294901760, %v5024_v1  ;;  %v1397_v34 = vand.u32 4294901760, %v1396_v59 }
  0xa2   :  { %4105 = vmatprep.subr.bf16.mxu1 %v4104_v9  ;;  %v3914_v38 = vpack.c.bf16 %v554_v30, %v542_v61  ;;  %v571_v32 = vsub.f32 %v6766_v43, %v6548_v52  ;;  %v6552_v57 = vand.u32 4294901760, %v5028_v29  ;;  %v1409_v16 = vand.u32 4294901760, %v1408_v10 }
  0xa3   :  { %v560_v5 = vand.u32 4294901760, %v559_v7  ;;  %v1414_v28 = vsub.f32 %v6767_v24, %v6550_v18  ;;  %v1426_v39 = vsub.f32 %v5024_v1, %v6560_v13  ;;  %v6553_v30 = vand.u32 4294901760, %v5030_v46 }
  0xa4   :  { %3915 = vmatpush1.bf16.msra.mxu0 %v3914_v38  ;;  %v572_v9 = vand.u32 4294901760, %v571_v32  ;;  %v565_v61 = vsub.f32 %v5028_v29, %v6552_v57  ;;  %v6557_v59 = vand.u32 4294901760, %v5034_v55  ;;  %v4106_v10 = vpack.c.bf16 %v1409_v16, %v1397_v34 }
  0xa5   :  { %v1415_v7 = vand.u32 4294901760, %v1414_v28  ;;  %v1427_v52 = vand.u32 4294901760, %v1426_v39  ;;  %v6554_v43 = vand.u32 4294901760, %v5036_v3  ;;  %v577_v38 = vsub.f32 %v5030_v46, %v6553_v30 }
  0xa6   :  { %v3916_v18 = vpack.c.bf16 %v572_v9, %v560_v5  ;;  %v566_v24 = vand.u32 4294901760, %v565_v61  ;;  %v1420_v32 = vsub.f32 %v5034_v55, %v6557_v59  ;;  %4107 = vmatpush1.bf16.msra.mxu1 %v4106_v10  ;;  %v6555_v28 = vand.u32 4294901760, %v5042_v33 }
  0xa7   :  { %v4108_v57 = vpack.c.bf16 %v1427_v52, %v1415_v7  ;;  %v1432_v16 = vsub.f32 %v5036_v3, %v6554_v43  ;;  %v6556_v39 = vand.u32 4294901760, %v5044_v31  ;;  %v578_v5 = vand.u32 4294901760, %v577_v38 }
  0xa8   :  { %3917 = vmatprep.subr.bf16.mxu0 %v3916_v18  ;;  %v1421_v34 = vand.u32 4294901760, %v1420_v32  ;;  %v6558_v9 = vand.u32 4294901760, %v5048_v11  ;;  %v6559_v61 = vand.u32 4294901760, %v5054_v56  ;;  %v583_v52 = vsub.f32 %v5042_v33, %v6555_v28 }
  0xa9   :  { %4109 = vmatprep.subr.bf16.mxu1 %v4108_v57  ;;  %v1433_v30 = vand.u32 4294901760, %v1432_v16  ;;  %v595_v10 = vsub.f32 %v5044_v31, %v6556_v39  ;;  %v6564_v7 = vand.u32 4294901760, %v5058_v0  ;;  %v3918_v43 = vpack.c.bf16 %v578_v5, %v566_v24 }
  0xaa   :  { %v1438_v18 = vsub.f32 %v5048_v11, %v6558_v9  ;;  %v1450_v57 = vsub.f32 %v5054_v56, %v6559_v61  ;;  %v6561_v38 = vand.u32 4294901760, %v5063_v25  ;;  %v584_v16 = vand.u32 4294901760, %v583_v52 }
  0xab   :  { %v4110_v32 = vpack.c.bf16 %v1433_v30, %v1421_v34  ;;  %v596_v28 = vand.u32 4294901760, %v595_v10  ;;  %v589_v39 = vsub.f32 %v5058_v0, %v6564_v7  ;;  %3919 = vmatpush1.bf16.msra.mxu0 %v3918_v43  ;;  %v6562_v9 = vand.u32 4294901760, %v5067_v27  ;;  %v6774_v7 = vld [vmem:[#allocation40_spill] sm:$0xff] }
  0xac   :  { %v1439_v59 = vand.u32 4294901760, %v1438_v18  ;;  %v1451_v24 = vand.u32 4294901760, %v1450_v57  ;;  %v601_v5 = vsub.f32 %v5063_v25, %v6561_v38  ;;  %v6563_v30 = vand.u32 4294901760, %v5069_v44  ;;  %v6768_v18 = vld [vmem:[#allocation17_spill] sm:$0xff] }
  0xad   :  { %4111 = vmatpush1.bf16.msra.mxu1 %v4110_v32  ;;  %v3920_v61 = vpack.c.bf16 %v596_v28, %v584_v16  ;;  %v590_v13 = vand.u32 4294901760, %v589_v39  ;;  %v1444_v10 = vsub.f32 %v5067_v27, %v6562_v9  ;;  %v3924_v57 = vpack.c.bf16 %v6768_v18, %v4847_v17  ;;  %v6769_v16 = vld [vmem:[#allocation18_spill] sm:$0xff] }
  0xae   :  { %v4112_v34 = vpack.c.bf16 %v1451_v24, %v1439_v59  ;;  %v602_v52 = vand.u32 4294901760, %v601_v5  ;;  %v1456_v43 = vsub.f32 %v5069_v44, %v6563_v30  ;;  %v6770_v59 = vld [vmem:[#allocation20_spill] sm:$0xff]  ;;  %v6771_v5 = vld [vmem:[#allocation22_spill] sm:$0xff]  ;;  %v6775_v18 = vmov 0.0  }
  0xaf   :  { %3921 = vmatprep.subr.bf16.mxu0 %v3920_v61  ;;  %v1445_v28 = vand.u32 4294901760, %v1444_v10  ;;  %v4116_v24 = vpack.c.bf16 %v6770_v59, %v6769_v16  ;;  %v3926_v38 = vpack.c.bf16 %v6771_v5, %v4859_v26  ;;  %v3928_v61 = vpack.c.bf16 %v4876_v47, %v4872_v42  ;;  %v6772_v30 = vld [vmem:[#allocation80_spill] sm:$0xff] }
  0xb0   :  { %4113 = vmatprep.subr.bf16.mxu1 %v4112_v34  ;;  %v3922_v32 = vpack.c.bf16 %v602_v52, %v590_v13  ;;  %v1457_v39 = vand.u32 4294901760, %v1456_v43  ;;  %v4118_v13 = vpack.c.bf16 %v4870_v41, %v4868_v40  ;;  %v4120_v34 = vpack.c.bf16 %v4883_v51, %v4880_v49 }
  0xb1   :  { %v3930_v52 = vpack.c.bf16 %v4891_v62, %v4885_v53  ;;  %v4122_v10 = vpack.c.bf16 %v4897_v6, %v4893_v63  ;;  %v3932_v43 = vpack.c.bf16 %v4904_v12, %v4901_v8  ;;  %v6776_v17 = vand.u32 4294901760, %v6769_v16 }
  0xb2   :  { %3923 = vmatpush1.bf16.msra.mxu0 %v3922_v32  ;;  %v4114_v9 = vpack.c.bf16 %v1457_v39, %v1445_v28  ;;  %v4126_v32 = vpack.c.bf16 %v4925_v50, %v4923_v45  ;;  %v3936_v28 = vpack.c.bf16 %v4933_v58, %v4929_v54  ;;  %v3938_v39 = vpack.c.bf16 %v4947_v37, %v4943_v22 }
  0xb3   :  { %3925 = vmatprep.subr.bf16.mxu0 %v3924_v57  ;;  %v3934_v57 = vpack.c.bf16 %v4919_v36, %v4917_v35  ;;  %v6777_v44 = vand.u32 4294901760, %v6770_v59  ;;  %v6778_v25 = vand.u32 4294901760, %v4859_v26  ;;  %v6780_v56 = vand.u32 4294901760, %v4868_v40 }
  0xb4   :  { %4115 = vmatpush1.bf16.msra.mxu1 %v4114_v9  ;;  %v4124_v9 = vpack.c.bf16 %v4910_v15, %v4908_v14  ;;  %v6781_v11 = vand.u32 4294901760, %v4870_v41  ;;  %v6782_v16 = vand.u32 4294901760, %v4872_v42  ;;  %v6784_v26 = vand.u32 4294901760, %v4880_v49 }
  0xb5   :  { %638 = vmatmul.mubr.f32.vlgmr.msra.gmra.mrb[0].mxu0 %v6772_v30  ;;  %4117 = vmatprep.subr.bf16.mxu1 %v4116_v24  ;;  %v6773_v24 = vld [vmem:[#allocation39_spill] sm:$0xff]  ;;  %v5383_v27 = vpack.c.bf16 %v6777_v44, %v6776_v17  ;;  %v6783_v17 = vand.u32 4294901760, %v4876_v47  ;;  %v6785_v59 = vand.u32 4294901760, %v4883_v51  ;;  %v6786_v40 = vand.u32 4294901760, %v4885_v53 }
  0xb6   :  { %3927 = vmatpush1.bf16.msra.mxu0 %v3926_v38  ;;  %v4128_v38 = vpack.c.bf16 %v4940_v2, %v4937_v60  ;;  %772 = vmatprep.mubr.f32.mxu0 %v6775_v18  ;;  %v5396_v31 = vpack.c.bf16 %v6781_v11, %v6780_v56  ;;  %v6787_v41 = vand.u32 4294901760, %v4891_v62  ;;  %v6788_v42 = vand.u32 4294901760, %v4893_v63 }
  0xb7   :  { %3929 = vmatprep.subr.bf16.mxu0 %v3928_v61  ;;  %1493 = vmatmul.mubr.f32.vlgmr.msra.gmra.mrb[0].mxu1 %v6772_v30  ;;  %v3940_v61 = vpack.c.bf16 %v6774_v7, %v6773_v24  ;;  %v6779_v30 = vand.u32 4294901760, %v6771_v5  ;;  %v5402_v44 = vpack.c.bf16 %v6783_v17, %v6782_v16  ;;  %v6789_v47 = vand.u32 4294901760, %v4897_v6 }
  0xb8   :  { %4119 = vmatpush1.bf16.msra.mxu1 %v4118_v13  ;;  %1627 = vmatprep.mubr.f32.mxu1 %v6775_v18  ;;  %v5414_v11 = vpack.c.bf16 %v6787_v41, %v6786_v40  ;;  %v6791_v49 = vand.u32 4294901760, %v4904_v12  ;;  %v6792_v5 = vand.u32 4294901760, %v4908_v14  ;;  %v6793_v53 = vand.u32 4294901760, %v4910_v15  ;;  %v6810_v41 = vld [vmem:[#allocation41_spill] sm:$0xff] }
  0xb9   :  { %v5390_v0 = vpack.c.bf16 %v6779_v30, %v6778_v25  ;;  %4121 = vmatprep.subr.bf16.mxu1 %v4120_v34  ;;  %v5408_v25 = vpack.c.bf16 %v6785_v59, %v6784_v26  ;;  %v5420_v56 = vpack.c.bf16 %v6789_v47, %v6788_v42  ;;  %v6790_v30 = vand.u32 4294901760, %v4901_v8  ;;  %v6806_v59 = vld [vmem:[#allocation37_spill] sm:$0xff] }
  0xba   :  { %3931 = vmatpush1.bf16.msra.mxu0 %v3930_v52  ;;  %v5432_v62 = vpack.c.bf16 %v6793_v53, %v6792_v5  ;;  %v6794_v13 = vand.u32 4294901760, %v4917_v35  ;;  %v6795_v63 = vand.u32 4294901760, %v4919_v36  ;;  %v6796_v34 = vand.u32 4294901760, %v4923_v45  ;;  %v6813_v47 = vld [vmem:[#allocation45_spill] sm:$0xff] }
  0xbb   :  { %3933 = vmatprep.subr.bf16.mxu0 %v3932_v43  ;;  %v5426_v51 = vpack.c.bf16 %v6791_v49, %v6790_v30  ;;  %v6797_v8 = vand.u32 4294901760, %v4925_v50  ;;  %v6798_v12 = vand.u32 4294901760, %v4929_v54  ;;  %v6799_v14 = vand.u32 4294901760, %v4933_v58  ;;  %v6804_v50 = vld [vmem:[#allocation36_spill] sm:$0xff]  ;;  %v6815_v49 = vld [vmem:[#allocation46_spill] sm:$0xff] }
  0xbc   :  { %v5438_v6 = vpack.c.bf16 %v6795_v63, %v6794_v13  ;;  %v6800_v15 = vand.u32 4294901760, %v4937_v60  ;;  %v6801_v35 = vand.u32 4294901760, %v4940_v2  ;;  %v6802_v36 = vand.u32 4294901760, %v4943_v22  ;;  %4123 = vmatpush1.bf16.msra.mxu1 %v4122_v10  ;;  %v6818_v13 = vld [vmem:[#allocation48_spill] sm:$0xff]  ;;  %v6820_v63 = vld [vmem:[#allocation49_spill] sm:$0xff] }
  0xbd   :  { %v5444_v52 = vpack.c.bf16 %v6797_v8, %v6796_v34  ;;  %v5450_v43 = vpack.c.bf16 %v6799_v14, %v6798_v12  ;;  %v6803_v45 = vand.u32 4294901760, %v4947_v37  ;;  %v6805_v26 = vand.u32 4294901760, %v6804_v50  ;;  %4125 = vmatprep.subr.bf16.mxu1 %v4124_v9  ;;  %v6825_v12 = vld [vmem:[#allocation52_spill] sm:$0xff] }
  0xbe   :  { %v5456_v16 = vpack.c.bf16 %v6801_v35, %v6800_v15  ;;  %v6807_v54 = vand.u32 4294901760, %v6806_v59  ;;  %v6808_v58 = vand.u32 4294901760, %v6773_v24  ;;  %v6809_v60 = vand.u32 4294901760, %v6774_v7  ;;  %3935 = vmatpush1.bf16.msra.mxu0 %v3934_v57  ;;  %v6823_v7 = vld [vmem:[#allocation51_spill] sm:$0xff]  ;;  %v6828_v35 = vld [vmem:[#allocation53_spill] sm:$0xff] }
  0xbf   :  { %v5462_v17 = vpack.c.bf16 %v6803_v45, %v6802_v36  ;;  %v6811_v42 = vand.u32 4294901760, %v6810_v41  ;;  %v6812_v22 = vand.u32 4294901760, %v6753_v21  ;;  %v6814_v30 = vand.u32 4294901760, %v6813_v47  ;;  %v6830_v45 = vld [vmem:[#allocation55_spill] sm:$0xff]  ;;  %3937 = vmatprep.subr.bf16.mxu0 %v3936_v28 }
  0xc0   :  { %v5468_v40 = vpack.c.bf16 %v6807_v54, %v6805_v26  ;;  %v5474_v2 = vpack.c.bf16 %v6809_v60, %v6808_v58  ;;  %v6816_v5 = vand.u32 4294901760, %v6815_v49  ;;  %v6819_v10 = vand.u32 4294901760, %v6818_v13  ;;  %4127 = vmatpush1.bf16.msra.mxu1 %v4126_v32 }
  0xc1   :  { %v5480_v37 = vpack.c.bf16 %v6812_v22, %v6811_v42  ;;  %v6821_v24 = vand.u32 4294901760, %v6820_v63  ;;  %v6824_v8 = vand.u32 4294901760, %v6823_v7  ;;  %v6826_v14 = vand.u32 4294901760, %v6825_v12  ;;  %4129 = vmatprep.subr.bf16.mxu1 %v4128_v38 }
  0xc2   :  { %v5486_v53 = vpack.c.bf16 %v6816_v5, %v6814_v30  ;;  %v6829_v36 = vand.u32 4294901760, %v6828_v35  ;;  %v6831_v26 = vand.u32 4294901760, %v6830_v45  ;;  %v6833_v58 = vand.u32 4294901760, %v6761_v19  ;;  %v6840_v5 = vld [vmem:[#allocation64_spill] sm:$0xff]  ;;  %3939 = vmatpush1.bf16.msra.mxu0 %v3938_v39 }
  0xc3   :  { %v5492_v34 = vpack.c.bf16 %v6821_v24, %v6819_v10  ;;  %v5498_v15 = vpack.c.bf16 %v6826_v14, %v6824_v8  ;;  %v6834_v60 = vand.u32 4294901760, %v6762_v4  ;;  %v6836_v9 = vand.u32 4294901760, %v6763_v23  ;;  %v6843_v8 = vld [vmem:[#allocation65_spill] sm:$0xff]  ;;  %3941 = vmatprep.subr.bf16.mxu0 %v3940_v61 }
  0xc4   :  { %6817 = vst [vmem:[#allocation43_spill] sm:$0xff] %v5486_v53  ;;  %v5504_v54 = vpack.c.bf16 %v6831_v26, %v6829_v36  ;;  %v6837_v57 = vand.u32 4294901760, %v6764_v48  ;;  %v6839_v30 = vand.u32 4294901760, %v6765_v20  ;;  %v6841_v10 = vand.u32 4294901760, %v6840_v5 }
  0xc5   :  { %6822 = vst [vmem:[#allocation57_spill] sm:$0xff] %v5492_v34  ;;  %6827 = vst [vmem:[#allocation58_spill] sm:$0xff] %v5498_v15  ;;  %v5510_v42 = vpack.c.bf16 %v6834_v60, %v6833_v58  ;;  %v6844_v14 = vand.u32 4294901760, %v6843_v8  ;;  %v6845_v36 = vand.u32 4294901760, %v5024_v1  ;;  %v6847_v28 = vand.u32 4294901760, %v5028_v29 }
  0xc6   :  { %6832 = vst [vmem:[#allocation60_spill] sm:$0xff] %v5504_v54  ;;  %v5516_v22 = vpack.c.bf16 %v6837_v57, %v6836_v9  ;;  %v5522_v24 = vpack.c.bf16 %v6841_v10, %v6839_v30  ;;  %v6848_v58 = vand.u32 4294901760, %v5030_v46  ;;  %v6850_v9 = vand.u32 4294901760, %v5034_v55  ;;  %v6854_v10 = vld [vmem:[#allocation70_spill] sm:$0xff] }
  0xc7   :  { %6835 = vst [vmem:[#allocation61_spill] sm:$0xff] %v5510_v42  ;;  %v5528_v26 = vpack.c.bf16 %v6845_v36, %v6844_v14  ;;  %v6851_v57 = vand.u32 4294901760, %v5036_v3  ;;  %v6853_v30 = vand.u32 4294901760, %v5042_v33  ;;  %v6857_v14 = vld [vmem:[#allocation71_spill] sm:$0xff]  ;;  %v3944_v32 = vpack.c.bf16 %v6825_v12, %v6823_v7  ;;  %v6879_v7 = vld [vmem:[#allocation29_spill] sm:$0xff]  ;;  %v6880_v12 = vld [vmem:[#allocation30_spill] sm:$0xff] }
  0xc8   :  { %6838 = vst [vmem:[#allocation63_spill] sm:$0xff] %v5516_v22  ;;  %6842 = vst [vmem:[#allocation18_spill] sm:$0xff] %v5522_v24  ;;  %v5534_v60 = vpack.c.bf16 %v6848_v58, %v6847_v28  ;;  %v6855_v24 = vand.u32 4294901760, %v6854_v10  ;;  %v6858_v36 = vand.u32 4294901760, %v6857_v14  ;;  %v6861_v28 = vld [vmem:[#allocation75_spill] sm:$0xff]  ;;  %v4136_v38 = vpack.c.bf16 %v6830_v45, %v6828_v35  ;;  %v6883_v45 = vld [vmem:[#allocation33_spill] sm:$0xff] }
  0xc9   :  { %6846 = vst [vmem:[#allocation20_spill] sm:$0xff] %v5528_v26  ;;  %v5540_v22 = vpack.c.bf16 %v6851_v57, %v6850_v9  ;;  %v6859_v26 = vld [vmem:[#allocation73_spill] sm:$0xff]  ;;  %v6862_v58 = vand.u32 4294901760, %v6861_v28  ;;  %v4130_v9 = vpack.c.bf16 %v6806_v59, %v6804_v50  ;;  %v6865_v57 = vld [vmem:[#allocation78_spill] sm:$0xff]  ;;  %v4134_v50 = vpack.c.bf16 %v6820_v63, %v6818_v13  ;;  %v6877_v13 = vld [vmem:[#allocation28_spill] sm:$0xff] }
  0xca   :  { %6849 = vst [vmem:[#allocation22_spill] sm:$0xff] %v5534_v60  ;;  %v5546_v42 = vpack.c.bf16 %v6855_v24, %v6853_v30  ;;  %v6860_v54 = vand.u32 4294901760, %v6859_v26  ;;  %v6863_v60 = vld [vmem:[#allocation76_spill] sm:$0xff]  ;;  %v6867_v24 = vld [vmem:[#allocation79_spill] sm:$0xff]  ;;  %v3946_v39 = vpack.c.bf16 %v6762_v4, %v6761_v19  ;;  %v4138_v61 = vpack.c.bf16 %v6764_v48, %v6763_v23 }
  0xcb   :  { %6852 = vst [vmem:[#allocation39_spill] sm:$0xff] %v5540_v22  ;;  %v6864_v15 = vand.u32 4294901760, %v6863_v60  ;;  %v6866_v22 = vand.u32 4294901760, %v6865_v57  ;;  %v6868_v30 = vand.u32 4294901760, %v6867_v24  ;;  %4131 = vmatpush1.bf16.msra.mxu1 %v4130_v9  ;;  %v4140_v59 = vpack.c.bf16 %v5024_v1, %v6843_v8  ;;  %v6869_v1 = vld [vmem:[#allocation15_spill] sm:$0xff]  ;;  %v6893_v9 = vld [vmem:[#allocation62_spill] sm:$0xff] }
  0xcc   :  { %6856 = vst [vmem:[#allocation40_spill] sm:$0xff] %v5546_v42  ;;  %v5552_v34 = vpack.c.bf16 %v6860_v54, %v6858_v36  ;;  %v4132_v54 = vpack.c.bf16 %v6753_v21, %v6810_v41  ;;  %v3942_v36 = vpack.c.bf16 %v6815_v49, %v6813_v47  ;;  %v3948_v21 = vpack.c.bf16 %v6840_v5, %v6765_v20  ;;  %v6874_v20 = vld [vmem:[#allocation23_spill] sm:$0xff]  ;;  %v6875_v47 = vld [vmem:[#allocation25_spill] sm:$0xff]  ;;  %v6876_v49 = vld [vmem:[#allocation26_spill] sm:$0xff] }
  0xcd   :  { %v5558_v53 = vpack.c.bf16 %v6864_v15, %v6862_v58  ;;  %v5566_v42 = vpack.c.bf16 %v6868_v30, %v6866_v22  ;;  %v3950_v41 = vpack.c.bf16 %v5030_v46, %v5028_v29  ;;  %v3952_v19 = vpack.c.bf16 %v6854_v10, %v5042_v33  ;;  %v6870_v29 = vld [vmem:[#allocation81_spill] sm:$0xff]  ;;  %v6873_v33 = vld [vmem:[#allocation24_spill] sm:$0xff]  ;;  %v6878_v63 = vld [vmem:[#allocation27_spill] sm:$0xff] }
  0xce   :  { %4133 = vmatprep.subr.bf16.mxu1 %v4132_v54  ;;  %3943 = vmatpush1.bf16.msra.mxu0 %v3942_v36  ;;  %v4142_v4 = vpack.c.bf16 %v5036_v3, %v5034_v55  ;;  %v4144_v23 = vpack.c.bf16 %v6859_v26, %v6857_v14  ;;  %v3954_v48 = vpack.c.bf16 %v6863_v60, %v6861_v28  ;;  %v6871_v55 = vld [vmem:[#allocation19_spill] sm:$0xff]  ;;  %v6872_v3 = vld [vmem:[#allocation21_spill] sm:$0xff]  ;;  %v6881_v15 = vld [vmem:[#allocation32_spill] sm:$0xff] }
  0xcf   :  { %3945 = vmatprep.subr.bf16.mxu0 %v3944_v32  ;;  %4135 = vmatpush1.bf16.msra.mxu1 %v4134_v50  ;;  %v4146_v46 = vpack.c.bf16 %v6867_v24, %v6865_v57  ;;  %v6882_v35 = vld [vmem:[#allocation31_spill] sm:$0xff]  ;;  %v6884_v22 = vld [vmem:[#allocation34_spill] sm:$0xff]  ;;  %v6888_v60 = vld [vmem:[#allocation44_spill] sm:$0xff] }
  0xd0   :  { %4137 = vmatprep.subr.bf16.mxu1 %v4136_v38  ;;  %v6885_v5 = vld [vmem:[#allocation38_spill] sm:$0xff]  ;;  %v6886_v8 = vld [vmem:[#allocation35_spill] sm:$0xff]  ;;  %v6892_v58 = vld [vmem:[#allocation56_spill] sm:$0xff] }
  0xd1   :  { %v6887_v26 = vld [vmem:[#allocation42_spill] sm:$0xff]  ;;  %v6890_v14 = vld [vmem:[#allocation47_spill] sm:$0xff]  ;;  %v6897_v54 = vld [vmem:[#allocation69_spill] sm:$0xff] }
  0xd2   :  { %3947 = vmatpush1.bf16.msra.mxu0 %v3946_v39  ;;  %v6889_v10 = vld [vmem:[#allocation50_spill] sm:$0xff]  ;;  %v6894_v57 = vld [vmem:[#allocation59_spill] sm:$0xff]  ;;  %v6898_v36 = vld [vmem:[#allocation16_spill] sm:$0xff] }
  0xd3   :  { %3949 = vmatprep.subr.bf16.mxu0 %v3948_v21  ;;  %4139 = vmatpush1.bf16.msra.mxu1 %v4138_v61  ;;  %v6891_v28 = vld [vmem:[#allocation54_spill] sm:$0xff]  ;;  %v6896_v30 = vld [vmem:[#allocation67_spill] sm:$0xff]  ;;  %v6899_v32 = vand.u32 4294901760, %v6898_v36  ;;  %v6900_v50 = vld [vmem:[#allocation17_spill] sm:$0xff] }
  0xd4   :  { %4141 = vmatprep.subr.bf16.mxu1 %v4140_v59  ;;  %v6895_v24 = vld [vmem:[#allocation66_spill] sm:$0xff]  ;;  %v6901_v38 = vand.u32 4294901760, %v6900_v50  ;;  %v6902_v21 = vld [vmem:[#allocation68_spill] sm:$0xff] }
  0xd5   :  { %v6903_v61 = vld [vmem:[#allocation72_spill] sm:$0xff]  ;;  %v6904_v59 = vld [vmem:[#allocation74_spill] sm:$0xff] }
  0xd6   :  { %3951 = vmatpush1.bf16.msra.mxu0 %v3950_v41  ;;  %v3988_v39 = vpack.c.bf16 %v6901_v38, %v6899_v32  ;;  %v6905_v41 = vld [vmem:[#allocation77_spill] sm:$0xff]  ;;  %v224_v50 = vld [vmem:[#allocation8 + $0x100] sm:$0xff]  ;;  %v231_v38 = vld [vmem:[#allocation8 + $0x138] sm:$0xff] }
  0xd7   :  { %3953 = vmatprep.subr.bf16.mxu0 %v3952_v19  ;;  %4143 = vmatpush1.bf16.msra.mxu1 %v4142_v4  ;;  %v6906_v19 = vld [vmem:[#allocation82_spill] sm:$0xff] }
  0xd8   :  { %4145 = vmatprep.subr.bf16.mxu1 %v4144_v23 }
  0xda   :  { %3955 = vmatpush1.bf16.msra.mxu0 %v3954_v48  ;;  %v211_v48 = vld [vmem:[#allocation8 + $0x98] sm:$0xff] }
  0xdb   :  { %3957 = vmatprep.subr.bf16.mxu0 %v6869_v1  ;;  %4147 = vmatpush1.bf16.msra.mxu1 %v4146_v46  ;;  %v218_v46 = vld [vmem:[#allocation8 + $0xd0] sm:$0xff] }
  0xdc   :  { %4149 = vmatprep.subr.bf16.mxu1 %v6871_v55 }
  0xdd   :  { %775 = vmatmul.mubr.f32.vlgmr.msra.gmra.mrb[0].mxu0 %v6870_v29 }
  0xde   :  { %3959 = vmatpush1.bf16.msra.mxu0 %v6872_v3  ;;  %877 = vmatprep.mubr.f32.mxu0 %v6775_v18 }
  0xdf   :  { %3961 = vmatprep.subr.bf16.mxu0 %v6873_v33  ;;  %1630 = vmatmul.mubr.f32.vlgmr.msra.gmra.mrb[0].mxu1 %v6870_v29  ;;  %v267_v29 = vld [vmem:[#allocation8 + $0x258] sm:$0xff] }
  0xe0   :  { %4151 = vmatpush1.bf16.msra.mxu1 %v6874_v20  ;;  %1732 = vmatprep.mubr.f32.mxu1 %v6775_v18 }
  0xe1   :  { %4153 = vmatprep.subr.bf16.mxu1 %v6875_v47 }
  0xe2   :  { %3963 = vmatpush1.bf16.msra.mxu0 %v6876_v49 }
  0xe3   :  { %3965 = vmatprep.subr.bf16.mxu0 %v6877_v13 }
  0xe4   :  { %4155 = vmatpush1.bf16.msra.mxu1 %v6878_v63 }
  0xe5   :  { %4157 = vmatprep.subr.bf16.mxu1 %v6879_v7 }
  0xe6   :  { %3967 = vmatpush1.bf16.msra.mxu0 %v6880_v12 }
  0xe7   :  { %3969 = vmatprep.subr.bf16.mxu0 %v6881_v15 }
  0xe8   :  { %4159 = vmatpush1.bf16.msra.mxu1 %v6882_v35 }
  0xe9   :  { %4161 = vmatprep.subr.bf16.mxu1 %v6883_v45 }
  0xea   :  { %3971 = vmatpush1.bf16.msra.mxu0 %v6884_v22 }
  0xeb   :  { %3973 = vmatprep.subr.bf16.mxu0 %v6885_v5 }
  0xec   :  { %4163 = vmatpush1.bf16.msra.mxu1 %v6886_v8 }
  0xed   :  { %4165 = vmatprep.subr.bf16.mxu1 %v6887_v26 }
  0xee   :  { %3975 = vmatpush1.bf16.msra.mxu0 %v6888_v60 }
  0xef   :  { %3977 = vmatprep.subr.bf16.mxu0 %v6889_v10 }
  0xf0   :  { %4167 = vmatpush1.bf16.msra.mxu1 %v6890_v14 }
  0xf1   :  { %4169 = vmatprep.subr.bf16.mxu1 %v6891_v28 }
  0xf2   :  { %3979 = vmatpush1.bf16.msra.mxu0 %v6892_v58 }
  0xf3   :  { %3981 = vmatprep.subr.bf16.mxu0 %v6893_v9 }
  0xf4   :  { %4171 = vmatpush1.bf16.msra.mxu1 %v6894_v57 }
  0xf5   :  { %4173 = vmatprep.subr.bf16.mxu1 %v6895_v24 }
  0xf6   :  { %3983 = vmatpush1.bf16.msra.mxu0 %v6896_v30 }
  0xf7   :  { %3985 = vmatprep.subr.bf16.mxu0 %v6897_v54 }
  0xf8   :  { %4175 = vmatpush1.bf16.msra.mxu1 %v6902_v21 }
  0xf9   :  { %4177 = vmatprep.subr.bf16.mxu1 %v6903_v61 }
  0xfa   :  { %3987 = vmatpush1.bf16.msra.mxu0 %v6904_v59 }
  0xfb   :  { %3989 = vmatprep.subr.bf16.mxu0 %v3988_v39 }
  0xfc   :  { %4179 = vmatpush1.bf16.msra.mxu1 %v6905_v41 }
  0xfd   :  { %881 = vmatmul.mubr.f32.vlgmr.msra.gmra.mrb[0].mxu0 %v6906_v19  ;;  %4181 = vmatprep.subr.bf16.mxu1 %v5383_v27  ;;  %v6907_v27 = vld [vmem:[#allocation43_spill] sm:$0xff] }
  0xfe   :  { %3991 = vmatpush1.bf16.msra.mxu0 %v5390_v0  ;;  %1047 = vmatprep.mubr.f32.mxu0 %v6775_v18  ;;  %v6909_v0 = vld [vmem:[#allocation57_spill] sm:$0xff] }
  0xff   :  { %3993 = vmatprep.subr.bf16.mxu0 %v5402_v44  ;;  %1736 = vmatmul.mubr.f32.vlgmr.msra.gmra.mrb[0].mxu1 %v6906_v19  ;;  %v6910_v44 = vld [vmem:[#allocation60_spill] sm:$0xff] }
 0x100   :  { %4183 = vmatpush1.bf16.msra.mxu1 %v5396_v31  ;;  %1902 = vmatprep.mubr.f32.mxu1 %v6775_v18  ;;  %v6908_v31 = vld [vmem:[#allocation58_spill] sm:$0xff] }
 0x101   :  { %4185 = vmatprep.subr.bf16.mxu1 %v5408_v25  ;;  %v6911_v25 = vld [vmem:[#allocation61_spill] sm:$0xff] }
 0x102   :  { %3995 = vmatpush1.bf16.msra.mxu0 %v5414_v11  ;;  %v6912_v11 = vld [vmem:[#allocation18_spill] sm:$0xff] }
 0x103   :  { %3997 = vmatprep.subr.bf16.mxu0 %v5426_v51  ;;  %v6914_v51 = vld [vmem:[#allocation20_spill] sm:$0xff] }
 0x104   :  { %4187 = vmatpush1.bf16.msra.mxu1 %v5420_v56  ;;  %v6913_v56 = vld [vmem:[#allocation63_spill] sm:$0xff] }
 0x105   :  { %4189 = vmatprep.subr.bf16.mxu1 %v5432_v62  ;;  %v6915_v62 = vld [vmem:[#allocation22_spill] sm:$0xff] }
 0x106   :  { %3999 = vmatpush1.bf16.msra.mxu0 %v5438_v6  ;;  %v6916_v6 = vld [vmem:[#allocation40_spill] sm:$0xff] }
 0x107   :  { %4001 = vmatprep.subr.bf16.mxu0 %v5450_v43  ;;  %v6918_v43 = vld [vmem:[#allocation80_spill] sm:$0xff] }
 0x108   :  { %4191 = vmatpush1.bf16.msra.mxu1 %v5444_v52  ;;  %v6917_v52 = vld [vmem:[#allocation39_spill] sm:$0xff] }
 0x109   :  { %4193 = vmatprep.subr.bf16.mxu1 %v5456_v16  ;;  %v197_v16 = vld [vmem:[#allocation8 + $0x28] sm:$0xff] }
 0x10a   :  { %4003 = vmatpush1.bf16.msra.mxu0 %v5462_v17  ;;  %v204_v17 = vld [vmem:[#allocation8 + $0x60] sm:$0xff] }
 0x10b   :  { %4005 = vmatprep.subr.bf16.mxu0 %v5474_v2  ;;  %v203_v2 = vld [vmem:[#allocation8 + $0x58] sm:$0xff] }
 0x10c   :  { %4195 = vmatpush1.bf16.msra.mxu1 %v5468_v40  ;;  %v196_v40 = vld [vmem:[#allocation8 + $0x20] sm:$0xff]  ;;  %v2020_v23 = vand.u32 4294901760, %v203_v2 }
 0x10d   :  { %4197 = vmatprep.subr.bf16.mxu1 %v5480_v37  ;;  %v198_v37 = vld [vmem:[#allocation8 + $0x30] sm:$0xff]  ;;  %v2016_v4 = vand.u32 4294901760, %v196_v40 }
 0x10e   :  { %4007 = vmatpush1.bf16.msra.mxu0 %v6907_v27  ;;  %v5704_v36 = vsub.f32 %v203_v2, %v2020_v23 }
 0x10f   :  { %4009 = vmatprep.subr.bf16.mxu0 %v6908_v31 }
 0x110   :  { %4199 = vmatpush1.bf16.msra.mxu1 %v6909_v0 }
 0x111   :  { %4201 = vmatprep.subr.bf16.mxu1 %v6910_v44  ;;  %v226_v44 = vld [vmem:[#allocation8 + $0x110] sm:$0xff] }
 0x112   :  { %4011 = vmatpush1.bf16.msra.mxu0 %v6911_v25 }
 0x113   :  { %4013 = vmatprep.subr.bf16.mxu0 %v6912_v11 }
 0x114   :  { %4203 = vmatpush1.bf16.msra.mxu1 %v6913_v56 }
 0x115   :  { %4205 = vmatprep.subr.bf16.mxu1 %v6914_v51 }
 0x116   :  { %4015 = vmatpush1.bf16.msra.mxu0 %v6915_v62 }
 0x117   :  { %4017 = vmatprep.subr.bf16.mxu0 %v6916_v6  ;;  %v2036_v6 = vand.u32 4294901760, %v231_v38 }
 0x118   :  { %4207 = vmatpush1.bf16.msra.mxu1 %v6917_v52  ;;  %v239_v52 = vld [vmem:[#allocation8 + $0x178] sm:$0xff] }
 0x119   :  { %4209 = vmatprep.subr.bf16.mxu1 %v5552_v34  ;;  %v2014_v34 = vand.u32 4294901760, %v197_v16 }
 0x11a   :  { %4019 = vmatpush1.bf16.msra.mxu0 %v5558_v53  ;;  %v205_v53 = vld [vmem:[#allocation8 + $0x68] sm:$0xff] }
 0x11b   :  { %4021 = vmatprep.subr.bf16.mxu0 %v6869_v1  ;;  %v2870_v1 = vand.u32 4294901760, %v198_v37 }
 0x11c   :  { %4211 = vmatpush1.bf16.msra.mxu1 %v5566_v42  ;;  %v2018_v42 = vand.u32 4294901760, %v204_v17 }
 0x11d   :  { %1049 = vmatmul.mubr.f32.vlgmr.msra.gmra.mrb[0].mxu0 %v6918_v43  ;;  %4213 = vmatprep.subr.bf16.mxu1 %v6871_v55  ;;  %v2873_v55 = vand.u32 4294901760, %v205_v53  ;;  %v5710_v27 = vsub.f32 %v198_v37, %v2870_v1 }
 0x11e   :  { %4023 = vmatpush1.bf16.msra.mxu0 %v6872_v3  ;;  %1151 = vmatprep.mubr.f32.mxu0 %v6775_v18  ;;  %v210_v3 = vld [vmem:[#allocation8 + $0x90] sm:$0xff] }
 0x11f   :  { %4025 = vmatprep.subr.bf16.mxu0 %v6873_v33  ;;  %1904 = vmatmul.mubr.f32.vlgmr.msra.gmra.mrb[0].mxu1 %v6918_v43  ;;  %v217_v33 = vld [vmem:[#allocation8 + $0xc8] sm:$0xff]  ;;  %v5708_v39 = vpack.c.bf16 %v2873_v55, %v2870_v1  ;;  %v5713_v25 = vsub.f32 %v205_v53, %v2873_v55  ;;  %v240_v1 = vld [vmem:[#allocation8 + $0x180] sm:$0xff] }
 0x120   :  { %4215 = vmatpush1.bf16.msra.mxu1 %v6874_v20  ;;  %2006 = vmatprep.mubr.f32.mxu1 %v6775_v18  ;;  %v2022_v20 = vand.u32 4294901760, %v211_v48  ;;  %v2028_v32 = vand.u32 4294901760, %v217_v33 }
 0x121   :  { %4217 = vmatprep.subr.bf16.mxu1 %v6875_v47  ;;  %v2026_v47 = vand.u32 4294901760, %v218_v46  ;;  %6921 = vst [vmem:[#allocation41_spill] sm:$0xff] %v5708_v39  ;;  %6922 = vst [vmem:[#allocation45_spill] sm:$0xff] %v5713_v25 }
 0x122   :  { %4027 = vmatpush1.bf16.msra.mxu0 %v6876_v49  ;;  %v212_v49 = vld [vmem:[#allocation8 + $0xa0] sm:$0xff]  ;;  %v5717_v62 = vsub.f32 %v211_v48, %v2022_v20  ;;  %v5728_v37 = vsub.f32 %v217_v33, %v2028_v32  ;;  %v2038_v48 = vand.u32 4294901760, %v239_v52 }
 0x123   :  { %4029 = vmatprep.subr.bf16.mxu0 %v6877_v13  ;;  %v219_v13 = vld [vmem:[#allocation8 + $0xd8] sm:$0xff]  ;;  %v2876_v31 = vand.u32 4294901760, %v212_v49  ;;  %v5715_v11 = vpack.c.bf16 %v2026_v47, %v2022_v20  ;;  %v253_v20 = vld [vmem:[#allocation8 + $0x1e8] sm:$0xff] }
 0x124   :  { %4219 = vmatpush1.bf16.msra.mxu1 %v6878_v63  ;;  %v5693_v63 = vpack.c.bf16 %v2018_v42, %v2014_v34  ;;  %v2879_v0 = vand.u32 4294901760, %v219_v13 }
 0x125   :  { %4221 = vmatprep.subr.bf16.mxu1 %v6879_v7  ;;  %v5695_v7 = vsub.f32 %v197_v16, %v2014_v34  ;;  %6923 = vst [vmem:[#allocation46_spill] sm:$0xff] %v5715_v11  ;;  %v246_v16 = vld [vmem:[#allocation8 + $0x1b0] sm:$0xff]  ;;  %v5732_v34 = vsub.f32 %v212_v49, %v2876_v31 }
 0x126   :  { %4031 = vmatpush1.bf16.msra.mxu0 %v6880_v12  ;;  %6919 = vst [vmem:[#allocation36_spill] sm:$0xff] %v5693_v63  ;;  %v5697_v12 = vsub.f32 %v204_v17, %v2018_v42  ;;  %v5730_v53 = vpack.c.bf16 %v2879_v0, %v2876_v31  ;;  %v238_v42 = vld [vmem:[#allocation8 + $0x170] sm:$0xff]  ;;  %v259_v31 = vld [vmem:[#allocation8 + $0x218] sm:$0xff] }
 0x127   :  { %4033 = vmatprep.subr.bf16.mxu0 %v6881_v15  ;;  %v5699_v15 = vpack.c.bf16 %v2020_v23, %v2016_v4  ;;  %6926 = vst [vmem:[#allocation51_spill] sm:$0xff] %v5732_v34 }
 0x128   :  { %4223 = vmatpush1.bf16.msra.mxu1 %v6882_v35  ;;  %v225_v35 = vld [vmem:[#allocation8 + $0x108] sm:$0xff]  ;;  %6925 = vst [vmem:[#allocation49_spill] sm:$0xff] %v5730_v53 }
 0x129   :  { %4225 = vmatprep.subr.bf16.mxu1 %v6883_v45  ;;  %6920 = vst [vmem:[#allocation37_spill] sm:$0xff] %v5699_v15  ;;  %v232_v45 = vld [vmem:[#allocation8 + $0x140] sm:$0xff]  ;;  %v2030_v56 = vand.u32 4294901760, %v225_v35 }
 0x12a   :  { %4035 = vmatpush1.bf16.msra.mxu0 %v6884_v22  ;;  %v5702_v22 = vsub.f32 %v196_v40, %v2016_v4  ;;  %v2034_v51 = vand.u32 4294901760, %v232_v45  ;;  %v245_v4 = vld [vmem:[#allocation8 + $0x1a8] sm:$0xff] }
 0x12b   :  { %4037 = vmatprep.subr.bf16.mxu0 %v6885_v5  ;;  %v2024_v5 = vand.u32 4294901760, %v210_v3  ;;  %v5739_v55 = vsub.f32 %v225_v35, %v2030_v56 }
 0x12c   :  { %4227 = vmatpush1.bf16.msra.mxu1 %v6886_v8  ;;  %v233_v8 = vld [vmem:[#allocation8 + $0x148] sm:$0xff]  ;;  %v5737_v23 = vpack.c.bf16 %v2034_v51, %v2030_v56  ;;  %v254_v56 = vld [vmem:[#allocation8 + $0x1f0] sm:$0xff] }
 0x12d   :  { %4229 = vmatprep.subr.bf16.mxu1 %v6887_v26  ;;  %v5719_v26 = vsub.f32 %v218_v46, %v2026_v47  ;;  %v5722_v17 = vpack.c.bf16 %v2028_v32, %v2024_v5  ;;  %v5724_v40 = vsub.f32 %v210_v3, %v2024_v5  ;;  %v2885_v2 = vand.u32 4294901760, %v233_v8  ;;  %v260_v47 = vld [vmem:[#allocation8 + $0x220] sm:$0xff] }
 0x12e   :  { %4039 = vmatpush1.bf16.msra.mxu0 %v6888_v60  ;;  %v2032_v60 = vand.u32 4294901760, %v224_v50  ;;  %6928 = vst [vmem:[#allocation53_spill] sm:$0xff] %v5737_v23  ;;  %v2042_v46 = vand.u32 4294901760, %v246_v16  ;;  %v2044_v5 = vand.u32 4294901760, %v245_v4  ;;  %v252_v32 = vld [vmem:[#allocation8 + $0x1e0] sm:$0xff] }
 0x12f   :  { %4041 = vmatprep.subr.bf16.mxu0 %v6889_v10  ;;  %6924 = vst [vmem:[#allocation48_spill] sm:$0xff] %v5722_v17  ;;  %v2882_v10 = vand.u32 4294901760, %v226_v44 }
 0x130   :  { %4231 = vmatpush1.bf16.msra.mxu1 %v6890_v14  ;;  %v5735_v14 = vsub.f32 %v219_v13, %v2879_v0  ;;  %v5743_v3 = vpack.c.bf16 %v2036_v6, %v2032_v60  ;;  %v5745_v33 = vsub.f32 %v224_v50, %v2032_v60  ;;  %v2040_v13 = vand.u32 4294901760, %v238_v42 }
 0x131   :  { %4233 = vmatprep.subr.bf16.mxu1 %v6891_v28  ;;  %v247_v28 = vld [vmem:[#allocation8 + $0x1b8] sm:$0xff]  ;;  %v5750_v49 = vpack.c.bf16 %v2885_v2, %v2882_v10  ;;  %v5754_v35 = vsub.f32 %v226_v44, %v2882_v10  ;;  %v2888_v50 = vand.u32 4294901760, %v240_v1  ;;  %v2046_v60 = vand.u32 4294901760, %v253_v20 }
 0x132   :  { %4043 = vmatpush1.bf16.msra.mxu0 %v6892_v58  ;;  %6927 = vst [vmem:[#allocation52_spill] sm:$0xff] %v5735_v14  ;;  %v5741_v58 = vsub.f32 %v232_v45, %v2034_v51  ;;  %6929 = vst [vmem:[#allocation55_spill] sm:$0xff] %v5743_v3  ;;  %v5756_v45 = vsub.f32 %v233_v8, %v2885_v2  ;;  %v2891_v0 = vand.u32 4294901760, %v247_v28  ;;  %v2052_v44 = vand.u32 4294901760, %v259_v31 }
 0x133   :  { %4045 = vmatprep.subr.bf16.mxu0 %v6893_v9  ;;  %v5748_v9 = vsub.f32 %v231_v38, %v2036_v6  ;;  %6931 = vst [vmem:[#allocation65_spill] sm:$0xff] %v5750_v49  ;;  %6932 = vst [vmem:[#allocation70_spill] sm:$0xff] %v5754_v35  ;;  %v5759_v38 = vpack.c.bf16 %v2042_v46, %v2038_v48  ;;  %v5761_v51 = vsub.f32 %v239_v52, %v2038_v48  ;;  %v266_v48 = vld [vmem:[#allocation8 + $0x250] sm:$0xff] }
 0x134   :  { %4235 = vmatpush1.bf16.msra.mxu1 %v6894_v57  ;;  %6933 = vst [vmem:[#allocation71_spill] sm:$0xff] %v5756_v45  ;;  %v261_v57 = vld [vmem:[#allocation8 + $0x228] sm:$0xff]  ;;  %v2050_v6 = vand.u32 4294901760, %v260_v47  ;;  %v5763_v19 = vsub.f32 %v246_v16, %v2042_v46  ;;  %v5768_v8 = vpack.c.bf16 %v2044_v5, %v2040_v13  ;;  %v5770_v10 = vsub.f32 %v245_v4, %v2044_v5  ;;  %v274_v45 = vld [vmem:[#allocation8 + $0x290] sm:$0xff] }
 0x135   :  { %6930 = vst [vmem:[#allocation64_spill] sm:$0xff] %v5748_v9  ;;  %4237 = vmatprep.subr.bf16.mxu1 %v6895_v24  ;;  %6934 = vst [vmem:[#allocation73_spill] sm:$0xff] %v5759_v38  ;;  %v5765_v24 = vsub.f32 %v238_v42, %v2040_v13  ;;  %v2894_v2 = vand.u32 4294901760, %v254_v56  ;;  %v5774_v52 = vpack.c.bf16 %v2891_v0, %v2888_v50 }
 0x136   :  { %4047 = vmatpush1.bf16.msra.mxu0 %v6896_v30  ;;  %6935 = vst [vmem:[#allocation75_spill] sm:$0xff] %v5761_v51  ;;  %v2048_v30 = vand.u32 4294901760, %v252_v32  ;;  %6937 = vst [vmem:[#allocation78_spill] sm:$0xff] %v5768_v8  ;;  %v5776_v16 = vsub.f32 %v240_v1, %v2888_v50  ;;  %v5778_v42 = vsub.f32 %v247_v28, %v2891_v0  ;;  %v2054_v28 = vand.u32 4294901760, %v267_v29  ;;  %v288_v0 = vld [vmem:[#allocation8 + $0x300] sm:$0xff] }
 0x137   :  { %4049 = vmatprep.subr.bf16.mxu0 %v6897_v54  ;;  %6936 = vst [vmem:[#allocation76_spill] sm:$0xff] %v5765_v24  ;;  %6938 = vst [vmem:[#allocation79_spill] sm:$0xff] %v5770_v10  ;;  %v2897_v54 = vand.u32 4294901760, %v261_v57  ;;  %v5781_v4 = vpack.c.bf16 %v2050_v6, %v2046_v60  ;;  %v5783_v46 = vsub.f32 %v253_v20, %v2046_v60  ;;  %v281_v10 = vld [vmem:[#allocation8 + $0x2c8] sm:$0xff]  ;;  %v2058_v50 = vand.u32 4294901760, %v274_v45 }
 0x138   :  { %4239 = vmatpush1.bf16.msra.mxu1 %v6902_v21  ;;  %6939 = vst [vmem:[#allocation15_spill] sm:$0xff] %v5774_v52  ;;  %6940 = vst [vmem:[#allocation19_spill] sm:$0xff] %v5776_v16  ;;  %v273_v21 = vld [vmem:[#allocation8 + $0x288] sm:$0xff]  ;;  %v5785_v13 = vsub.f32 %v260_v47, %v2050_v6  ;;  %v5787_v5 = vsub.f32 %v252_v32, %v2048_v30  ;;  %v5789_v24 = vpack.c.bf16 %v2052_v44, %v2048_v30  ;;  %v6593_v6 = vmov 0.0|0.0  }
 0x139   :  { %4241 = vmatprep.subr.bf16.mxu1 %v6903_v61  ;;  %6941 = vst [vmem:[#allocation21_spill] sm:$0xff] %v5778_v42  ;;  %6942 = vst [vmem:[#allocation24_spill] sm:$0xff] %v5781_v4  ;;  %v268_v61 = vld [vmem:[#allocation8 + $0x260] sm:$0xff]  ;;  %v5791_v1 = vsub.f32 %v259_v31, %v2052_v44  ;;  %v5795_v20 = vpack.c.bf16 %v2897_v54, %v2894_v2  ;;  %v5797_v47 = vsub.f32 %v254_v56, %v2894_v2  ;;  %v289_v56 = vld [vmem:[#allocation8 + $0x308] sm:$0xff] }
 0x13a   :  { %4051 = vmatpush1.bf16.msra.mxu0 %v6904_v59  ;;  %6943 = vst [vmem:[#allocation23_spill] sm:$0xff] %v5783_v46  ;;  %6944 = vst [vmem:[#allocation25_spill] sm:$0xff] %v5785_v13  ;;  %v275_v59 = vld [vmem:[#allocation8 + $0x298] sm:$0xff]  ;;  %v280_v42 = vld [vmem:[#allocation8 + $0x2c0] sm:$0xff]  ;;  %v2056_v32 = vand.u32 4294901760, %v266_v48  ;;  %v2060_v60 = vand.u32 4294901760, %v273_v21  ;;  %v5801_v31 = vsub.f32 %v261_v57, %v2897_v54  ;;  %v5806_v2 = vpack.c.bf16 %v2058_v50, %v2054_v28 }
 0x13b   :  { %4245 = vmatprep.subr.bf16.mxu0 %v5693_v63  ;;  %6945 = vst [vmem:[#allocation26_spill] sm:$0xff] %v5787_v5  ;;  %6946 = vst [vmem:[#allocation28_spill] sm:$0xff] %v5789_v24  ;;  %v287_v63 = vld [vmem:[#allocation8 + $0x2f8] sm:$0xff]  ;;  %v2900_v30 = vand.u32 4294901760, %v268_v61  ;;  %v2903_v44 = vand.u32 4294901760, %v275_v59  ;;  %v2064_v5 = vand.u32 4294901760, %v280_v42  ;;  %v5810_v57 = vsub.f32 %v274_v45, %v2058_v50 }
 0x13c   :  { %6947 = vst [vmem:[#allocation27_spill] sm:$0xff] %v5791_v1  ;;  %4243 = vmatpush1.bf16.msra.mxu1 %v6905_v41  ;;  %6948 = vst [vmem:[#allocation29_spill] sm:$0xff] %v5795_v20  ;;  %v2062_v41 = vand.u32 4294901760, %v281_v10  ;;  %v2066_v1 = vand.u32 4294901760, %v288_v0  ;;  %v2068_v13 = vand.u32 4294901760, %v287_v63  ;;  %v282_v46 = vld [vmem:[#allocation8 + $0x2d0] sm:$0xff]  ;;  %v5812_v54 = vsub.f32 %v266_v48, %v2056_v32 }
 0x13d   :  { %1153 = vmatmul.mubr.f32.vlgmr.msra.gmra.mrb[0].mxu0 %v6918_v43  ;;  %6949 = vst [vmem:[#allocation30_spill] sm:$0xff] %v5797_v47  ;;  %4436 = vmatprep.subr.bf16.mxu1 %v6593_v6  ;;  %6950 = vst [vmem:[#allocation32_spill] sm:$0xff] %v5801_v31  ;;  %v5808_v6 = vsub.f32 %v267_v29, %v2054_v28  ;;  %v5819_v31 = vsub.f32 %v268_v61, %v2900_v30  ;;  %v295_v47 = vld [vmem:[#allocation8 + $0x338] sm:$0xff]  ;;  %v2906_v48 = vand.u32 4294901760, %v282_v46  ;;  %v302_v50 = vld [vmem:[#allocation8 + $0x370] sm:$0xff] }
 0x13e   :  { %4247 = vmatpush1.bf16.msra.mxu0 %v5699_v15  ;;  %2110 = vmatprep.mubr.f32.mxu0 %v6775_v18  ;;  %6951 = vst [vmem:[#allocation31_spill] sm:$0xff] %v5806_v2  ;;  %6952 = vst [vmem:[#allocation33_spill] sm:$0xff] %v5810_v57  ;;  %v5817_v15 = vsub.f32 %v273_v21, %v2060_v60  ;;  %v5825_v29 = vpack.c.bf16 %v2903_v44, %v2900_v30  ;;  %v2909_v28 = vand.u32 4294901760, %v289_v56  ;;  %v294_v21 = vld [vmem:[#allocation8 + $0x330] sm:$0xff] }
 0x13f   :  { %4249 = vmatprep.subr.bf16.mxu0 %v5715_v11  ;;  %2008 = vmatmul.mubr.f32.vlgmr.msra.gmra.mrb[0].mxu1 %v6918_v43  ;;  %6953 = vst [vmem:[#allocation34_spill] sm:$0xff] %v5812_v54  ;;  %v5815_v11 = vpack.c.bf16 %v2060_v60, %v2056_v32  ;;  %6956 = vst [vmem:[#allocation42_spill] sm:$0xff] %v5819_v31  ;;  %v6957_v43 = vmov 0.0|0.0   ;;  %v5827_v45 = vsub.f32 %v275_v59, %v2903_v44  ;;  %v301_v32 = vld [vmem:[#allocation8 + $0x368] sm:$0xff]  ;;  %v2074_v54 = vand.u32 4294901760, %v302_v50 }
 0x140   :  { %4438 = vmatpush3.bf16.msra.mxu1 %v5708_v39  ;;  %6955 = vst [vmem:[#allocation35_spill] sm:$0xff] %v5817_v15  ;;  %3682 = vmatprep.mubr.msk.f32.mxu1 %vm4756_vm0, %v6775_v18  ;;  %6958 = vst [vmem:[#allocation44_spill] sm:$0xff] %v5825_v29  ;;  %v5830_v61 = vpack.c.bf16 %v2066_v1, %v2062_v41  ;;  %v5832_v60 = vsub.f32 %v281_v10, %v2062_v41  ;;  %v2072_v10 = vand.u32 4294901760, %v294_v21 }
 0x141   :  { %6954 = vst [vmem:[#allocation38_spill] sm:$0xff] %v5815_v11  ;;  %4439 = vmatprep.subr.bf16.mxu1 %v6957_v43  ;;  %6959 = vst [vmem:[#allocation50_spill] sm:$0xff] %v5827_v45  ;;  %v5834_v39 = vsub.f32 %v288_v0, %v2066_v1  ;;  %v5836_v31 = vpack.c.bf16 %v2068_v13, %v2064_v5  ;;  %v5838_v30 = vsub.f32 %v280_v42, %v2064_v5  ;;  %v303_v45 = vld [vmem:[#allocation8 + $0x378] sm:$0xff] }
 0x142   :  { %4251 = vmatpush1.bf16.msra.mxu0 %v5722_v17  ;;  %6960 = vst [vmem:[#allocation47_spill] sm:$0xff] %v5830_v61  ;;  %v296_v17 = vld [vmem:[#allocation8 + $0x340] sm:$0xff]  ;;  %v5840_v59 = vsub.f32 %v287_v63, %v2068_v13  ;;  %v5842_v44 = vsub.f32 %v282_v46, %v2906_v48  ;;  %v2076_v41 = vand.u32 4294901760, %v301_v32  ;;  %v5848_v1 = vpack.c.bf16 %v2909_v28, %v2906_v48 }
 0x143   :  { %4253 = vmatprep.subr.bf16.mxu0 %v5737_v23  ;;  %6961 = vst [vmem:[#allocation54_spill] sm:$0xff] %v5836_v31  ;;  %6962 = vst [vmem:[#allocation56_spill] sm:$0xff] %v5838_v30  ;;  %v2070_v23 = vand.u32 4294901760, %v295_v47  ;;  %v2912_v42 = vand.u32 4294901760, %v296_v17  ;;  %v2915_v13 = vand.u32 4294901760, %v303_v45  ;;  %v6625_v15 = vand.u32 4294901760, %v5713_v25 }
 0x144   :  { %6963 = vst [vmem:[#allocation62_spill] sm:$0xff] %v5842_v44  ;;  %4441 = vmatpush3.bf16.msra.mxu1 %v5730_v53  ;;  %6964 = vst [vmem:[#allocation59_spill] sm:$0xff] %v5848_v1  ;;  %v5856_v53 = vsub.f32 %v289_v56, %v2909_v28  ;;  %v6965_v48 = vand.u32 4294901760, %v5695_v7  ;;  %v5869_v5 = vpack.c.bf16 %v2076_v41, %v2072_v10  ;;  %v6968_v56 = vand.u32 4294901760, %v5697_v12 }
 0x145   :  { %4442 = vmatprep.subr.bf16.mxu1 %v6957_v43  ;;  %v5858_v44 = vsub.f32 %v295_v47, %v2070_v23  ;;  %v5865_v46 = vpack.c.bf16 %v2074_v54, %v2070_v23  ;;  %v5871_v0 = vsub.f32 %v294_v21, %v2072_v10  ;;  %v5875_v47 = vsub.f32 %v301_v32, %v2076_v41 }
 0x146   :  { %4255 = vmatpush1.bf16.msra.mxu0 %v5743_v3  ;;  %v2125_v3 = vsub.f32 %v5695_v7, %v6965_v48  ;;  %6967 = vst [vmem:[#allocation67_spill] sm:$0xff] %v5869_v5  ;;  %v2137_v28 = vsub.f32 %v5697_v12, %v6968_v56  ;;  %v6969_v48 = vand.u32 4294901760, %v5702_v22  ;;  %v6971_v21 = vand.u32 4294901760, %v5704_v36 }
 0x147   :  { %4257 = vmatprep.subr.bf16.mxu0 %v5759_v38  ;;  %6966 = vst [vmem:[#allocation66_spill] sm:$0xff] %v5865_v46  ;;  %v5867_v38 = vsub.f32 %v302_v50, %v2074_v54  ;;  %v5885_v50 = vpack.c.bf16 %v2915_v13, %v2912_v42  ;;  %v6972_v32 = vand.u32 4294901760, %v5710_v27  ;;  %v2971_v56 = vsub.f32 %v5713_v25, %v6625_v15 }
 0x148   :  { %4444 = vmatpush3.bf16.msra.mxu1 %v5750_v49  ;;  %v2131_v23 = vsub.f32 %v5702_v22, %v6969_v48  ;;  %v2143_v10 = vsub.f32 %v5704_v36, %v6971_v21  ;;  %v5896_v63 = vsub.f32 %v296_v17, %v2912_v42  ;;  %v2126_v48 = vand.u32 4294901760, %v2125_v3 }
 0x149   :  { %4445 = vmatprep.subr.bf16.mxu1 %v6957_v43  ;;  %6970 = vst [vmem:[#allocation69_spill] sm:$0xff] %v5885_v50  ;;  %v2964_v41 = vsub.f32 %v5710_v27, %v6972_v32  ;;  %v6973_v54 = vand.u32 4294901760, %v5717_v62  ;;  %v2138_v17 = vand.u32 4294901760, %v2137_v28  ;;  %v6974_v42 = vand.u32 4294901760, %v5719_v26 }
 0x14a   :  { %4259 = vmatpush1.bf16.msra.mxu0 %v5768_v8  ;;  %v2132_v3 = vand.u32 4294901760, %v2131_v23  ;;  %v6642_v8 = vand.u32 4294901760, %v5741_v58  ;;  %v2144_v21 = vand.u32 4294901760, %v2143_v10  ;;  %v5917_v15 = vsub.f32 %v303_v45, %v2915_v13 }
 0x14b   :  { %4261 = vmatprep.subr.bf16.mxu0 %v5781_v4  ;;  %v5901_v4 = vsub.f32 %v5717_v62, %v6973_v54  ;;  %v2161_v54 = vsub.f32 %v5719_v26, %v6974_v42  ;;  %v2965_v32 = vand.u32 4294901760, %v2964_v41  ;;  %v6975_v28 = vand.u32 4294901760, %v5724_v40 }
 0x14c   :  { %4447 = vmatpush3.bf16.msra.mxu1 %v5774_v52  ;;  %v2972_v52 = vand.u32 4294901760, %v2971_v56  ;;  %v6976_v42 = vand.u32 4294901760, %v5728_v37  ;;  %v6977_v41 = vand.u32 4294901760, %v5732_v34  ;;  %v6978_v45 = vand.u32 4294901760, %v5735_v14 }
 0x14d   :  { %4448 = vmatprep.subr.bf16.mxu1 %v6957_v43  ;;  %v2150_v25 = vand.u32 4294901760, %v5901_v4  ;;  %v2155_v23 = vsub.f32 %v5724_v40, %v6975_v28  ;;  %v6979_v13 = vand.u32 4294901760, %v5739_v55  ;;  %v2162_v49 = vand.u32 4294901760, %v2161_v54  ;;  %v6984_v54 = vld [vmem:[#allocation79_spill] sm:$0xff] }
 0x14e   :  { %4263 = vmatpush1.bf16.msra.mxu0 %v5789_v24  ;;  %v2167_v10 = vsub.f32 %v5728_v37, %v6976_v42  ;;  %v2978_v56 = vsub.f32 %v5732_v34, %v6977_v41  ;;  %v2985_v4 = vsub.f32 %v5735_v14, %v6978_v45  ;;  %v4276_v24 = vpack.c.bf16 %v2138_v17, %v2126_v48  ;;  %v6981_v14 = vld [vmem:[#allocation71_spill] sm:$0xff] }
 0x14f   :  { %4265 = vmatprep.subr.bf16.mxu0 %v5806_v2  ;;  %v2173_v28 = vsub.f32 %v5739_v55, %v6979_v13  ;;  %v2185_v42 = vsub.f32 %v5741_v58, %v6642_v8  ;;  %v6649_v41 = vand.u32 4294901760, %v5754_v35  ;;  %v5944_v45 = vpack.c.bf16 %v2972_v52, %v2965_v32 }
 0x150   :  { %4450 = vmatpush3.bf16.msra.mxu1 %v5795_v20  ;;  %v4278_v20 = vpack.c.bf16 %v2144_v21, %v2132_v3  ;;  %v6980_v2 = vand.u32 4294901760, %v5745_v33  ;;  %v6982_v48 = vand.u32 4294901760, %v5748_v9  ;;  %v2168_v21 = vand.u32 4294901760, %v2167_v10 }
 0x151   :  { %4451 = vmatprep.subr.bf16.mxu1 %v6957_v43  ;;  %v2979_v52 = vand.u32 4294901760, %v2978_v56  ;;  %v2986_v32 = vand.u32 4294901760, %v2985_v4  ;;  %v2174_v3 = vand.u32 4294901760, %v2173_v28  ;;  %v6985_v10 = vand.u32 4294901760, %v6981_v14  ;;  %v6986_v28 = vld [vmem:[#allocation21_spill] sm:$0xff] }
 0x152   :  { %4267 = vmatpush1.bf16.msra.mxu0 %v5815_v11  ;;  %v2179_v13 = vsub.f32 %v5745_v33, %v6980_v2  ;;  %v2156_v11 = vand.u32 4294901760, %v2155_v23  ;;  %v2191_v17 = vsub.f32 %v5748_v9, %v6982_v48  ;;  %v2186_v2 = vand.u32 4294901760, %v2185_v42  ;;  %v6983_v48 = vld [vmem:[#allocation76_spill] sm:$0xff] }
 0x153   :  { %4269 = vmatprep.subr.bf16.mxu0 %v5830_v61  ;;  %v2992_v23 = vsub.f32 %v5754_v35, %v6649_v41  ;;  %v2999_v56 = vsub.f32 %v6981_v14, %v6985_v10  ;;  %v6988_v34 = vand.u32 4294901760, %v5763_v19  ;;  %v6989_v35 = vld [vmem:[#allocation23_spill] sm:$0xff]  ;;  %v4464_v10 = vpack.c.bf16 %v2986_v32, %v2979_v52  ;;  %v6990_v14 = vld [vmem:[#allocation25_spill] sm:$0xff]  ;;  %v6995_v32 = vld [vmem:[#allocation26_spill] sm:$0xff] }
 0x154   :  { %4453 = vmatpush3.bf16.msra.mxu1 %v5825_v29  ;;  %v2180_v8 = vand.u32 4294901760, %v2179_v13  ;;  %v2192_v42 = vand.u32 4294901760, %v2191_v17  ;;  %v6987_v29 = vand.u32 4294901760, %v5761_v51  ;;  %v4280_v13 = vpack.c.bf16 %v2162_v49, %v2150_v25 }
 0x155   :  { %4454 = vmatprep.subr.bf16.mxu1 %v6957_v43  ;;  %v2209_v61 = vsub.f32 %v5763_v19, %v6988_v34  ;;  %v4282_v9 = vpack.c.bf16 %v2168_v21, %v2156_v11  ;;  %v4284_v17 = vpack.c.bf16 %v2186_v2, %v2174_v3  ;;  %v6992_v34 = vand.u32 4294901760, %v6984_v54  ;;  %v7001_v3 = vld [vmem:[#allocation32_spill] sm:$0xff] }
 0x156   :  { %4271 = vmatpush1.bf16.msra.mxu0 %v5836_v31  ;;  %v2197_v41 = vsub.f32 %v5761_v51, %v6987_v29  ;;  %v2993_v31 = vand.u32 4294901760, %v2992_v23  ;;  %v6991_v29 = vand.u32 4294901760, %v6983_v48  ;;  %v3000_v25 = vand.u32 4294901760, %v2999_v56 }
 0x157   :  { %4273 = vmatprep.subr.bf16.mxu0 %v5865_v46  ;;  %v2215_v46 = vsub.f32 %v6984_v54, %v6992_v34  ;;  %v6993_v11 = vand.u32 4294901760, %v5776_v16  ;;  %v6994_v21 = vand.u32 4294901760, %v6986_v28  ;;  %v4286_v2 = vpack.c.bf16 %v2192_v42, %v2180_v8  ;;  %v7000_v42 = vld [vmem:[#allocation30_spill] sm:$0xff] }
 0x158   :  { %4456 = vmatpush3.bf16.msra.mxu1 %v5848_v1  ;;  %v2203_v51 = vsub.f32 %v6983_v48, %v6991_v29  ;;  %v2198_v23 = vand.u32 4294901760, %v2197_v41  ;;  %v2210_v4 = vand.u32 4294901760, %v2209_v61  ;;  %v6996_v29 = vand.u32 4294901760, %v6989_v35 }
 0x159   :  { %4457 = vmatprep.subr.bf16.mxu1 %v6957_v43  ;;  %v3006_v49 = vsub.f32 %v5776_v16, %v6993_v11  ;;  %v3013_v52 = vsub.f32 %v6986_v28, %v6994_v21  ;;  %v6998_v56 = vand.u32 4294901760, %v6990_v14  ;;  %v6999_v11 = vld [vmem:[#allocation27_spill] sm:$0xff]  ;;  %v2216_v41 = vand.u32 4294901760, %v2215_v46 }
 0x15a   :  { %4275 = vmatpush1.bf16.msra.mxu0 %v5869_v5  ;;  %v2221_v5 = vsub.f32 %v6989_v35, %v6996_v29  ;;  %v2204_v61 = vand.u32 4294901760, %v2203_v51  ;;  %v4467_v28 = vpack.c.bf16 %v3000_v25, %v2993_v31  ;;  %v4288_v8 = vpack.c.bf16 %v2210_v4, %v2198_v23  ;;  %v7003_v51 = vld [vmem:[#allocation34_spill] sm:$0xff]  ;;  %v7004_v21 = vld [vmem:[#allocation35_spill] sm:$0xff] }
 0x15b   :  { %4277 = vmatprep.subr.bf16.mxu0 %v4276_v24  ;;  %v6997_v24 = vld [vmem:[#allocation83_spill] sm:$0xff]  ;;  %v2233_v34 = vsub.f32 %v6990_v14, %v6998_v56  ;;  %v3007_v16 = vand.u32 4294901760, %v3006_v49  ;;  %v3014_v35 = vand.u32 4294901760, %v3013_v52  ;;  %v7002_v56 = vand.u32 4294901760, %v6995_v32 }
 0x15c   :  { %4459 = vmatpush3.bf16.msra.mxu1 %v5885_v50  ;;  %v6672_v50 = vand.u32 4294901760, %v7001_v3  ;;  %v6673_v46 = vand.u32 4294901760, %v7003_v51  ;;  %v6674_v29 = vand.u32 4294901760, %v7004_v21  ;;  %v7005_v31 = vand.u32 4294901760, %v6999_v11 }
 0x15d   :  { %2116 = vmatmul.mubr.f32.vlgmr.msra.gmra.mrb[2].mxu0 %v6997_v24  ;;  %4460 = vmatprep.subr.bf16.mxu1 %v6957_v43  ;;  %v2227_v1 = vsub.f32 %v6995_v32, %v7002_v56  ;;  %v7006_v49 = vand.u32 4294901760, %v5808_v6  ;;  %v7007_v56 = vand.u32 4294901760, %v5810_v57 }
 0x15e   :  { %4279 = vmatpush1.bf16.msra.mxu0 %v4278_v20  ;;  %2346 = vmatprep.mubr.f32.mxu0 %v6775_v18  ;;  %v2222_v20 = vand.u32 4294901760, %v2221_v5  ;;  %v2239_v25 = vsub.f32 %v6999_v11, %v7005_v31  ;;  %v4290_v5 = vpack.c.bf16 %v2216_v41, %v2204_v61  ;;  %v2263_v61 = vsub.f32 %v7004_v21, %v6674_v29  ;;  %v7009_v41 = vld [vmem:[#allocation42_spill] sm:$0xff] }
 0x15f   :  { %4281 = vmatprep.subr.bf16.mxu0 %v4280_v13  ;;  %3683 = vmatmul.mubr.f32.vlgmr.msra.gmra.mrb[2].mxu1 %v6997_v24  ;;  %v2234_v13 = vand.u32 4294901760, %v2233_v34  ;;  %v2245_v52 = vsub.f32 %v5808_v6, %v7006_v49  ;;  %v2257_v4 = vsub.f32 %v5810_v57, %v7007_v56  ;;  %v3027_v24 = vsub.f32 %v7001_v3, %v6672_v50  ;;  %v7014_v49 = vld [vmem:[#allocation62_spill] sm:$0xff] }
 0x160   :  { %4462 = vmatpush3.bf16.msra.mxu1 %v5944_v45  ;;  %3717 = vmatprep.mubr.msk.f32.mxu1 %vm4756_vm0, %v6775_v18  ;;  %v7008_v45 = vand.u32 4294901760, %v7000_v42  ;;  %v4470_v34 = vpack.c.bf16 %v3014_v35, %v3007_v16  ;;  %v2228_v31 = vand.u32 4294901760, %v2227_v1  ;;  %v2240_v35 = vand.u32 4294901760, %v2239_v25 }
 0x161   :  { %4463 = vmatprep.subr.bf16.mxu1 %v6957_v43  ;;  %v2246_v16 = vand.u32 4294901760, %v2245_v52  ;;  %v2258_v1 = vand.u32 4294901760, %v2257_v4  ;;  %v3028_v56 = vand.u32 4294901760, %v3027_v24  ;;  %v7011_v29 = vand.u32 4294901760, %v5832_v60 }
 0x162   :  { %4283 = vmatpush1.bf16.msra.mxu0 %v4282_v9  ;;  %v3020_v23 = vsub.f32 %v7000_v42, %v7008_v45  ;;  %v2251_v9 = vsub.f32 %v7003_v51, %v6673_v46  ;;  %v7010_v42 = vld [vmem:[#allocation50_spill] sm:$0xff]  ;;  %v2264_v52 = vand.u32 4294901760, %v2263_v61  ;;  %v7013_v4 = vand.u32 4294901760, %v7009_v41 }
 0x163   :  { %4285 = vmatprep.subr.bf16.mxu0 %v4284_v17  ;;  %v6675_v57 = vand.u32 4294901760, %v7010_v42  ;;  %v4292_v17 = vpack.c.bf16 %v2234_v13, %v2222_v20  ;;  %v2269_v45 = vsub.f32 %v5832_v60, %v7011_v29  ;;  %v6678_v13 = vand.u32 4294901760, %v5858_v44 }
 0x164   :  { %4465 = vmatpush3.bf16.msra.mxu1 %v4464_v10  ;;  %v3021_v50 = vand.u32 4294901760, %v3020_v23  ;;  %v7012_v10 = vand.u32 4294901760, %v5834_v39  ;;  %v3034_v23 = vsub.f32 %v7009_v41, %v7013_v4  ;;  %v4294_v29 = vpack.c.bf16 %v2240_v35, %v2228_v31 }
 0x165   :  { %4466 = vmatprep.subr.bf16.mxu1 %v6957_v43  ;;  %v4296_v24 = vpack.c.bf16 %v2258_v1, %v2246_v16  ;;  %v7016_v4 = vand.u32 4294901760, %v5840_v59  ;;  %v2270_v31 = vand.u32 4294901760, %v2269_v45  ;;  %v2293_v16 = vsub.f32 %v5858_v44, %v6678_v13 }
 0x166   :  { %4287 = vmatpush1.bf16.msra.mxu0 %v4286_v2  ;;  %v2281_v20 = vsub.f32 %v5834_v39, %v7012_v10  ;;  %v2252_v2 = vand.u32 4294901760, %v2251_v9  ;;  %v7015_v9 = vand.u32 4294901760, %v5838_v30  ;;  %v3035_v46 = vand.u32 4294901760, %v3034_v23 }
 0x167   :  { %4289 = vmatprep.subr.bf16.mxu0 %v4288_v8  ;;  %v3041_v8 = vsub.f32 %v7010_v42, %v6675_v57  ;;  %v2287_v25 = vsub.f32 %v5840_v59, %v7016_v4  ;;  %v6680_v57 = vand.u32 4294901760, %v5871_v0  ;;  %v7018_v4 = vand.u32 4294901760, %v7014_v49 }
 0x168   :  { %4468 = vmatpush3.bf16.msra.mxu1 %v4467_v28  ;;  %v2275_v61 = vsub.f32 %v5838_v30, %v7015_v9  ;;  %v2282_v35 = vand.u32 4294901760, %v2281_v20  ;;  %v4473_v9 = vpack.c.bf16 %v3028_v56, %v3021_v50  ;;  %v4298_v10 = vpack.c.bf16 %v2264_v52, %v2252_v2 }
 0x169   :  { %4469 = vmatprep.subr.bf16.mxu1 %v6957_v43  ;;  %v3042_v30 = vand.u32 4294901760, %v3041_v8  ;;  %v3048_v28 = vsub.f32 %v7014_v49, %v7018_v4  ;;  %v7019_v45 = vand.u32 4294901760, %v5856_v53  ;;  %v6679_v20 = vand.u32 4294901760, %v5896_v63 }
 0x16a   :  { %4291 = vmatpush1.bf16.msra.mxu0 %v4290_v5  ;;  %v7017_v5 = vand.u32 4294901760, %v5867_v38  ;;  %v2276_v50 = vand.u32 4294901760, %v2275_v61  ;;  %v2288_v56 = vand.u32 4294901760, %v2287_v25  ;;  %v7020_v2 = vand.u32 4294901760, %v5875_v47 }
 0x16b   :  { %4293 = vmatprep.subr.bf16.mxu0 %v4292_v17  ;;  %v3055_v17 = vsub.f32 %v5856_v53, %v7019_v45  ;;  %v4300_v23 = vpack.c.bf16 %v2282_v35, %v2270_v31  ;;  %v2294_v8 = vand.u32 4294901760, %v2293_v16  ;;  %v4476_v4 = vpack.c.bf16 %v3042_v30, %v3035_v46 }
 0x16c   :  { %v2305_v1 = vsub.f32 %v5867_v38, %v7017_v5  ;;  %4471 = vmatpush3.bf16.msra.mxu1 %v4470_v34  ;;  %v2299_v34 = vsub.f32 %v5871_v0, %v6680_v57  ;;  %v2311_v52 = vsub.f32 %v5875_v47, %v7020_v2  ;;  %v3049_v45 = vand.u32 4294901760, %v3048_v28  ;;  %v7049_v57 = vld [vmem:[#allocation15_spill] sm:$0xff] }
 0x16d   :  { %4472 = vmatprep.subr.bf16.mxu1 %v6957_v43  ;;  %v3056_v13 = vand.u32 4294901760, %v3055_v17  ;;  %v3062_v25 = vsub.f32 %v5896_v63, %v6679_v20  ;;  %v4302_v2 = vpack.c.bf16 %v2288_v56, %v2276_v50  ;;  %v7022_v17 = vld [vmem:[#allocation80_spill] sm:$0xff]  ;;  %v7023_v50 = vld [vmem:[#allocation45_spill] sm:$0xff] }
 0x16e   :  { %4295 = vmatpush1.bf16.msra.mxu0 %v4294_v29  ;;  %v2306_v5 = vand.u32 4294901760, %v2305_v1  ;;  %v7021_v29 = vand.u32 4294901760, %v5917_v15  ;;  %v2312_v31 = vand.u32 4294901760, %v2311_v52  ;;  %v4308_v1 = vpack.c.bf16 %v5697_v12, %v5695_v7  ;;  %v7048_v20 = vld [vmem:[#allocation24_spill] sm:$0xff] }
 0x16f   :  { %4297 = vmatprep.subr.bf16.mxu0 %v4296_v24  ;;  %v2300_v24 = vand.u32 4294901760, %v2299_v34  ;;  %v4479_v30 = vpack.c.bf16 %v3056_v13, %v3049_v45  ;;  %v3063_v46 = vand.u32 4294901760, %v3062_v25  ;;  %v4312_v13 = vpack.c.bf16 %v5719_v26, %v5717_v62  ;;  %v7027_v25 = vld [vmem:[#allocation75_spill] sm:$0xff] }
 0x170   :  { %4474 = vmatpush3.bf16.msra.mxu1 %v4473_v9  ;;  %v3069_v61 = vsub.f32 %v5917_v15, %v7021_v29  ;;  %v4304_v35 = vpack.c.bf16 %v2306_v5, %v2294_v8  ;;  %v4485_v56 = vpack.c.bf16 %v7023_v50, %v5710_v27  ;;  %v4314_v34 = vpack.c.bf16 %v5728_v37, %v5724_v40  ;;  %v7025_v8 = vld [vmem:[#allocation52_spill] sm:$0xff] }
 0x171   :  { %4475 = vmatprep.subr.bf16.mxu1 %v6957_v43  ;;  %v4306_v16 = vpack.c.bf16 %v2312_v31, %v2300_v24  ;;  %v4316_v52 = vpack.c.bf16 %v5741_v58, %v5739_v55  ;;  %v4320_v29 = vpack.c.bf16 %v5763_v19, %v7027_v25  ;;  %v4322_v31 = vpack.c.bf16 %v6984_v54, %v6983_v48 }
 0x172   :  { %4299 = vmatpush1.bf16.msra.mxu0 %v4298_v10  ;;  %v3070_v28 = vand.u32 4294901760, %v3069_v61  ;;  %v4310_v10 = vpack.c.bf16 %v5704_v36, %v5702_v22  ;;  %v7028_v61 = vld [vmem:[#allocation70_spill] sm:$0xff] }
 0x173   :  { %4301 = vmatprep.subr.bf16.mxu0 %v4300_v23  ;;  %v7024_v23 = vld [vmem:[#allocation51_spill] sm:$0xff] }
 0x174   :  { %4477 = vmatpush3.bf16.msra.mxu1 %v4476_v4  ;;  %v4482_v9 = vpack.c.bf16 %v3070_v28, %v3063_v46  ;;  %v4488_v5 = vpack.c.bf16 %v7025_v8, %v7024_v23  ;;  %v7026_v4 = vld [vmem:[#allocation64_spill] sm:$0xff]  ;;  %v7031_v46 = vld [vmem:[#allocation19_spill] sm:$0xff]  ;;  %v7032_v28 = vld [vmem:[#allocation21_spill] sm:$0xff] }
 0x175   :  { %4478 = vmatprep.subr.bf16.mxu1 %v6957_v43  ;;  %v4318_v45 = vpack.c.bf16 %v7026_v4, %v5745_v33 }
 0x176   :  { %4303 = vmatpush1.bf16.msra.mxu0 %v4302_v2  ;;  %v7029_v2 = vld [vmem:[#allocation71_spill] sm:$0xff] }
 0x177   :  { %4305 = vmatprep.subr.bf16.mxu0 %v4304_v35  ;;  %v4491_v24 = vpack.c.bf16 %v7029_v2, %v7028_v61  ;;  %v7030_v35 = vld [vmem:[#allocation23_spill] sm:$0xff] }
 0x178   :  { %4480 = vmatpush3.bf16.msra.mxu1 %v4479_v30  ;;  %v4324_v30 = vpack.c.bf16 %v6990_v14, %v7030_v35 }
 0x179   :  { %4481 = vmatprep.subr.bf16.mxu1 %v6957_v43 }
 0x17a   :  { %4307 = vmatpush1.bf16.msra.mxu0 %v4306_v16  ;;  %v4494_v16 = vpack.c.bf16 %v7032_v28, %v7031_v46 }
 0x17b   :  { %4309 = vmatprep.subr.bf16.mxu0 %v4308_v1  ;;  %v4326_v1 = vpack.c.bf16 %v6999_v11, %v6995_v32 }
 0x17c   :  { %4483 = vmatpush3.bf16.msra.mxu1 %v4482_v9  ;;  %v7033_v9 = vld [vmem:[#allocation33_spill] sm:$0xff] }
 0x17d   :  { %2348 = vmatmul.mubr.f32.vlgmr.msra.gmra.mrb[2].mxu0 %v7022_v17  ;;  %4484 = vmatprep.subr.bf16.mxu1 %v6957_v43 }
 0x17e   :  { %4311 = vmatpush1.bf16.msra.mxu0 %v4310_v10  ;;  %2482 = vmatprep.mubr.f32.mxu0 %v6775_v18  ;;  %v4328_v10 = vpack.c.bf16 %v7033_v9, %v5808_v6 }
 0x17f   :  { %4313 = vmatprep.subr.bf16.mxu0 %v4312_v13  ;;  %3718 = vmatmul.mubr.f32.vlgmr.msra.gmra.mrb[2].mxu1 %v7022_v17  ;;  %v7034_v13 = vld [vmem:[#allocation30_spill] sm:$0xff] }
 0x180   :  { %4486 = vmatpush3.bf16.msra.mxu1 %v4485_v56  ;;  %3752 = vmatprep.mubr.msk.f32.mxu1 %vm4756_vm0, %v6775_v18  ;;  %v4497_v56 = vpack.c.bf16 %v7001_v3, %v7034_v13 }
 0x181   :  { %4487 = vmatprep.subr.bf16.mxu1 %v6957_v43 }
 0x182   :  { %4315 = vmatpush1.bf16.msra.mxu0 %v4314_v34  ;;  %v4330_v34 = vpack.c.bf16 %v7004_v21, %v7003_v51 }
 0x183   :  { %4317 = vmatprep.subr.bf16.mxu0 %v4316_v52  ;;  %v4332_v52 = vpack.c.bf16 %v5834_v39, %v5832_v60 }
 0x184   :  { %4489 = vmatpush3.bf16.msra.mxu1 %v4488_v5  ;;  %v4500_v5 = vpack.c.bf16 %v7010_v42, %v7009_v41 }
 0x185   :  { %4490 = vmatprep.subr.bf16.mxu1 %v6957_v43 }
 0x186   :  { %4319 = vmatpush1.bf16.msra.mxu0 %v4318_v45  ;;  %v7035_v45 = vld [vmem:[#allocation56_spill] sm:$0xff] }
 0x187   :  { %4321 = vmatprep.subr.bf16.mxu0 %v4320_v29  ;;  %v4334_v29 = vpack.c.bf16 %v5840_v59, %v7035_v45 }
 0x188   :  { %4492 = vmatpush3.bf16.msra.mxu1 %v4491_v24  ;;  %v4336_v24 = vpack.c.bf16 %v5867_v38, %v5858_v44 }
 0x189   :  { %4493 = vmatprep.subr.bf16.mxu1 %v6957_v43 }
 0x18a   :  { %4323 = vmatpush1.bf16.msra.mxu0 %v4322_v31  ;;  %v4503_v31 = vpack.c.bf16 %v5856_v53, %v7014_v49 }
 0x18b   :  { %4325 = vmatprep.subr.bf16.mxu0 %v4324_v30  ;;  %v4338_v30 = vpack.c.bf16 %v5875_v47, %v5871_v0 }
 0x18c   :  { %4495 = vmatpush3.bf16.msra.mxu1 %v4494_v16  ;;  %v4506_v16 = vpack.c.bf16 %v5917_v15, %v5896_v63 }
 0x18d   :  { %4496 = vmatprep.subr.bf16.mxu1 %v6957_v43 }
 0x18e   :  { %4327 = vmatpush1.bf16.msra.mxu0 %v4326_v1  ;;  %v7036_v1 = vld [vmem:[#allocation36_spill] sm:$0xff] }
 0x18f   :  { %4329 = vmatprep.subr.bf16.mxu0 %v4328_v10  ;;  %v7037_v10 = vld [vmem:[#allocation81_spill] sm:$0xff] }
 0x190   :  { %4498 = vmatpush3.bf16.msra.mxu1 %v4497_v56  ;;  %v7038_v56 = vld [vmem:[#allocation37_spill] sm:$0xff] }
 0x191   :  { %4499 = vmatprep.subr.bf16.mxu1 %v6957_v43 }
 0x192   :  { %4331 = vmatpush1.bf16.msra.mxu0 %v4330_v34  ;;  %v7039_v34 = vld [vmem:[#allocation46_spill] sm:$0xff] }
 0x193   :  { %4333 = vmatprep.subr.bf16.mxu0 %v4332_v52  ;;  %v7040_v52 = vld [vmem:[#allocation41_spill] sm:$0xff] }
 0x194   :  { %4501 = vmatpush3.bf16.msra.mxu1 %v4500_v5  ;;  %v7041_v5 = vld [vmem:[#allocation48_spill] sm:$0xff] }
 0x195   :  { %4502 = vmatprep.subr.bf16.mxu1 %v6957_v43 }
 0x196   :  { %4335 = vmatpush1.bf16.msra.mxu0 %v4334_v29  ;;  %v7042_v29 = vld [vmem:[#allocation53_spill] sm:$0xff] }
 0x197   :  { %4337 = vmatprep.subr.bf16.mxu0 %v4336_v24  ;;  %v7043_v24 = vld [vmem:[#allocation49_spill] sm:$0xff] }
 0x198   :  { %4504 = vmatpush3.bf16.msra.mxu1 %v4503_v31  ;;  %v7044_v31 = vld [vmem:[#allocation55_spill] sm:$0xff] }
 0x199   :  { %4505 = vmatprep.subr.bf16.mxu1 %v6957_v43 }
 0x19a   :  { %4339 = vmatpush1.bf16.msra.mxu0 %v4338_v30  ;;  %v7045_v30 = vld [vmem:[#allocation73_spill] sm:$0xff] }
 0x19b   :  { %4341 = vmatprep.subr.bf16.mxu0 %v7036_v1 }
 0x19c   :  { %4507 = vmatpush3.bf16.msra.mxu1 %v4506_v16  ;;  %v7046_v16 = vld [vmem:[#allocation65_spill] sm:$0xff] }
 0x19d   :  { %2485 = vmatmul.mubr.f32.vlgmr.msra.gmra.mrb[2].mxu0 %v7037_v10  ;;  %4508 = vmatprep.subr.bf16.mxu1 %v6957_v43 }
 0x19e   :  { %4343 = vmatpush1.bf16.msra.mxu0 %v7038_v56  ;;  %2587 = vmatprep.mubr.f32.mxu0 %v6775_v18 }
 0x19f   :  { %4345 = vmatprep.subr.bf16.mxu0 %v7039_v34  ;;  %3753 = vmatmul.mubr.f32.vlgmr.msra.gmra.mrb[2].mxu1 %v7037_v10  ;;  %v7047_v10 = vld [vmem:[#allocation78_spill] sm:$0xff]  ;;  %v7066_v34 = vld [vmem:[#allocation69_spill] sm:$0xff] }
 0x1a0   :  { %4510 = vmatpush3.bf16.msra.mxu1 %v7040_v52  ;;  %3787 = vmatprep.mubr.msk.f32.mxu1 %vm4756_vm0, %v6775_v18 }
 0x1a1   :  { %4511 = vmatprep.subr.bf16.mxu1 %v6957_v43 }
 0x1a2   :  { %4347 = vmatpush1.bf16.msra.mxu0 %v7041_v5  ;;  %v7052_v5 = vld [vmem:[#allocation29_spill] sm:$0xff] }
 0x1a3   :  { %4349 = vmatprep.subr.bf16.mxu0 %v7042_v29  ;;  %v7050_v29 = vld [vmem:[#allocation28_spill] sm:$0xff] }
 0x1a4   :  { %4513 = vmatpush3.bf16.msra.mxu1 %v7043_v24  ;;  %v7051_v24 = vld [vmem:[#allocation31_spill] sm:$0xff] }
 0x1a5   :  { %4514 = vmatprep.subr.bf16.mxu1 %v6957_v43 }
 0x1a6   :  { %4351 = vmatpush1.bf16.msra.mxu0 %v7044_v31  ;;  %v7055_v31 = vld [vmem:[#allocation44_spill] sm:$0xff] }
 0x1a7   :  { %4353 = vmatprep.subr.bf16.mxu0 %v7045_v30  ;;  %v7053_v30 = vld [vmem:[#allocation38_spill] sm:$0xff] }
 0x1a8   :  { %4516 = vmatpush3.bf16.msra.mxu1 %v7046_v16  ;;  %v7054_v16 = vld [vmem:[#allocation47_spill] sm:$0xff] }
 0x1a9   :  { %4517 = vmatprep.subr.bf16.mxu1 %v6957_v43 }
 0x1aa   :  { %4355 = vmatpush1.bf16.msra.mxu0 %v7047_v10 }
 0x1ab   :  { %4357 = vmatprep.subr.bf16.mxu0 %v7048_v20  ;;  %v7056_v20 = vld [vmem:[#allocation54_spill] sm:$0xff] }
 0x1ac   :  { %4519 = vmatpush3.bf16.msra.mxu1 %v7049_v57  ;;  %v7057_v57 = vld [vmem:[#allocation66_spill] sm:$0xff] }
 0x1ad   :  { %4520 = vmatprep.subr.bf16.mxu1 %v6957_v43 }
 0x1ae   :  { %4359 = vmatpush1.bf16.msra.mxu0 %v7050_v29  ;;  %v7058_v29 = vand.u32 4294901760, %v5695_v7 }
 0x1af   :  { %4361 = vmatprep.subr.bf16.mxu0 %v7051_v24  ;;  %v7059_v24 = vand.u32 4294901760, %v5697_v12  ;;  %v7067_v12 = vld [vmem:[#allocation82_spill] sm:$0xff] }
 0x1b0   :  { %4522 = vmatpush3.bf16.msra.mxu1 %v7052_v5  ;;  %v7060_v5 = vld [vmem:[#allocation59_spill] sm:$0xff] }
 0x1b1   :  { %4523 = vmatprep.subr.bf16.mxu1 %v6957_v43  ;;  %v4372_v10 = vpack.c.bf16 %v7059_v24, %v7058_v29  ;;  %v7068_v29 = vand.u32 4294901760, %v5710_v27  ;;  %v7069_v24 = vand.u32 4294901760, %v7023_v50  ;;  %v7074_v27 = vand.u32 4294901760, %v7024_v23 }
 0x1b2   :  { %4363 = vmatpush1.bf16.msra.mxu0 %v7053_v30  ;;  %v7061_v30 = vld [vmem:[#allocation67_spill] sm:$0xff]  ;;  %v7075_v50 = vand.u32 4294901760, %v7025_v8  ;;  %v7080_v8 = vand.u32 4294901760, %v7028_v61  ;;  %v7086_v61 = vand.u32 4294901760, %v7031_v46  ;;  %v7092_v46 = vand.u32 4294901760, %v7034_v13 }
 0x1b3   :  { %4365 = vmatprep.subr.bf16.mxu0 %v7054_v16  ;;  %v7062_v16 = vand.u32 4294901760, %v5702_v22  ;;  %v7070_v22 = vand.u32 4294901760, %v5724_v40  ;;  %v7076_v40 = vand.u32 4294901760, %v5745_v33  ;;  %v7082_v33 = vand.u32 4294901760, %v6983_v48 }
 0x1b4   :  { %4525 = vmatpush3.bf16.msra.mxu1 %v7055_v31  ;;  %v7063_v31 = vand.u32 4294901760, %v5704_v36  ;;  %v7071_v36 = vand.u32 4294901760, %v5728_v37  ;;  %v7077_v37 = vand.u32 4294901760, %v7026_v4  ;;  %v7083_v4 = vand.u32 4294901760, %v6984_v54 }
 0x1b5   :  { %4526 = vmatprep.subr.bf16.mxu1 %v6957_v43  ;;  %v7088_v48 = vand.u32 4294901760, %v6995_v32  ;;  %v7089_v54 = vand.u32 4294901760, %v6999_v11  ;;  %v7094_v32 = vand.u32 4294901760, %v7003_v51  ;;  %v7095_v11 = vand.u32 4294901760, %v7004_v21 }
 0x1b6   :  { %4367 = vmatpush1.bf16.msra.mxu0 %v7056_v20  ;;  %v4374_v52 = vpack.c.bf16 %v7063_v31, %v7062_v16  ;;  %v7064_v20 = vand.u32 4294901760, %v5717_v62  ;;  %v4378_v62 = vpack.c.bf16 %v7071_v36, %v7070_v22  ;;  %v7079_v31 = vand.u32 4294901760, %v5763_v19 }
 0x1b7   :  { %4369 = vmatprep.subr.bf16.mxu0 %v7057_v57  ;;  %v7065_v57 = vand.u32 4294901760, %v5719_v26  ;;  %v7072_v26 = vand.u32 4294901760, %v5739_v55  ;;  %v4382_v55 = vpack.c.bf16 %v7077_v37, %v7076_v40  ;;  %v7085_v19 = vand.u32 4294901760, %v6990_v14  ;;  %v7118_v40 = vld [vmem:[#allocation78_spill] sm:$0xff]  ;;  %v7120_v37 = vld [vmem:[#allocation15_spill] sm:$0xff] }
 0x1b8   :  { %4528 = vmatpush3.bf16.msra.mxu1 %v7060_v5  ;;  %v7091_v14 = vand.u32 4294901760, %v7033_v9  ;;  %v4394_v36 = vpack.c.bf16 %v7095_v11, %v7094_v32  ;;  %v7097_v9 = vand.u32 4294901760, %v5834_v39  ;;  %v7098_v13 = vand.u32 4294901760, %v7009_v41 }
 0x1b9   :  { %4529 = vmatprep.subr.bf16.mxu1 %v6957_v43  ;;  %v4376_v7 = vpack.c.bf16 %v7065_v57, %v7064_v20  ;;  %v7073_v57 = vand.u32 4294901760, %v5741_v58  ;;  %v7078_v58 = vand.u32 4294901760, %v7027_v25  ;;  %v7084_v25 = vand.u32 4294901760, %v7030_v35 }
 0x1ba   :  { %4371 = vmatpush1.bf16.msra.mxu0 %v7061_v30  ;;  %v4533_v30 = vpack.c.bf16 %v7069_v24, %v7068_v29  ;;  %v4390_v29 = vpack.c.bf16 %v7089_v54, %v7088_v48  ;;  %v7090_v35 = vand.u32 4294901760, %v5808_v6  ;;  %v7096_v6 = vand.u32 4294901760, %v5832_v60  ;;  %v7128_v48 = vld [vmem:[#allocation66_spill] sm:$0xff] }
 0x1bb   :  { %4373 = vmatprep.subr.bf16.mxu0 %v4372_v10  ;;  %v4380_v20 = vpack.c.bf16 %v7073_v57, %v7072_v26  ;;  %v4384_v23 = vpack.c.bf16 %v7079_v31, %v7078_v58  ;;  %v4386_v10 = vpack.c.bf16 %v7083_v4, %v7082_v33  ;;  %v7100_v51 = vand.u32 4294901760, %v7035_v45  ;;  %v7122_v31 = vld [vmem:[#allocation31_spill] sm:$0xff]  ;;  %v78_v33 = vld [vmem:[#allocation7 + $0x8] sm:$0x3f] }
 0x1bc   :  { %4531 = vmatpush3.bf16.msra.mxu1 %v7066_v34  ;;  %v4392_v24 = vpack.c.bf16 %v7091_v14, %v7090_v35  ;;  %v7101_v21 = vand.u32 4294901760, %v5840_v59  ;;  %v7102_v60 = vand.u32 4294901760, %v5858_v44  ;;  %v7103_v39 = vand.u32 4294901760, %v5867_v38  ;;  %v7125_v4 = vld [vmem:[#allocation47_spill] sm:$0xff]  ;;  %v72_v35 = vld [vmem:[#allocation5 + $0x10] sm:$0x3f] }
 0x1bd   :  { %2591 = vmatmul.mubr.f32.vlgmr.msra.gmra.mrb[2].mxu0 %v7067_v12  ;;  %4532 = vmatprep.subr.bf16.mxu1 %v6957_v43  ;;  %v7104_v41 = vand.u32 4294901760, %v7014_v49  ;;  %v7106_v45 = vand.u32 4294901760, %v5871_v0  ;;  %v7107_v59 = vand.u32 4294901760, %v5875_v47  ;;  %v7108_v44 = vand.u32 4294901760, %v5896_v63  ;;  %v7112_v63 = vld [vmem:[#allocation48_spill] sm:$0xff]  ;;  %v7113_v0 = vld [vmem:[#allocation53_spill] sm:$0xff] }
 0x1be   :  { %4375 = vmatpush1.bf16.msra.mxu0 %v4374_v52  ;;  %2757 = vmatprep.mubr.f32.mxu0 %v6775_v18  ;;  %v4536_v52 = vpack.c.bf16 %v7075_v50, %v7074_v27  ;;  %v4398_v57 = vpack.c.bf16 %v7101_v21, %v7100_v51  ;;  %v7109_v38 = vand.u32 4294901760, %v5917_v15  ;;  %v7111_v15 = vld [vmem:[#allocation41_spill] sm:$0xff]  ;;  %v7115_v49 = vld [vmem:[#allocation55_spill] sm:$0xff]  ;;  %v107_v58 = vlaneseq }
 0x1bf   :  { %4377 = vmatprep.subr.bf16.mxu0 %v4376_v7  ;;  %3788 = vmatmul.mubr.f32.vlgmr.msra.gmra.mrb[2].mxu1 %v7067_v12  ;;  %v4388_v7 = vpack.c.bf16 %v7085_v19, %v7084_v25  ;;  %v4402_v50 = vpack.c.bf16 %v7107_v59, %v7106_v45  ;;  %v7114_v47 = vld [vmem:[#allocation49_spill] sm:$0xff]  ;;  %v79_v25 = vld [vmem:[#allocation7 + $0x10] sm:$0x3f]  ;;  %v7126_v19 = vld [vmem:[#allocation44_spill] sm:$0xff]  ;;  %vm85_vm2 = vcmp.ne.f32.partialorder %v78_v33, %v78_v33 }
 0x1c0   :  { %4534 = vmatpush3.bf16.msra.mxu1 %v4533_v30  ;;  %3822 = vmatprep.mubr.msk.f32.mxu1 %vm4756_vm0, %v6775_v18  ;;  %v7081_v30 = vand.u32 4294901760, %v7029_v2  ;;  %v7087_v2 = vand.u32 4294901760, %v7032_v28  ;;  %v7093_v28 = vand.u32 4294901760, %v7001_v3  ;;  %v7099_v3 = vand.u32 4294901760, %v7010_v42 }
 0x1c1   :  { %4535 = vmatprep.subr.bf16.mxu1 %v6957_v43  ;;  %v7105_v42 = vand.u32 4294901760, %v5856_v53  ;;  %v7110_v53 = vld [vmem:[#allocation46_spill] sm:$0xff]  ;;  %vm86_vm3 = vcmp.ne.f32.partialorder %v79_v25, %v79_v25 }
 0x1c2   :  { %4379 = vmatpush1.bf16.msra.mxu0 %v4378_v62  ;;  %v4539_v16 = vpack.c.bf16 %v7081_v30, %v7080_v8  ;;  %v4542_v12 = vpack.c.bf16 %v7087_v2, %v7086_v61  ;;  %v4545_v22 = vpack.c.bf16 %v7093_v28, %v7092_v46  ;;  %v4396_v62 = vpack.c.bf16 %v7097_v9, %v7096_v6  ;;  %v77_v8 = vld [vmem:[#allocation7] sm:$0x3f]  ;;  %v7124_v30 = vld [vmem:[#allocation38_spill] sm:$0xff]  ;;  %v80_v61 = vld [vmem:[#allocation7 + $0x18] sm:$0x3f] }
 0x1c3   :  { %4381 = vmatprep.subr.bf16.mxu0 %v4380_v20  ;;  %v4548_v26 = vpack.c.bf16 %v7099_v3, %v7098_v13  ;;  %v4400_v20 = vpack.c.bf16 %v7103_v39, %v7102_v60  ;;  %v4551_v27 = vpack.c.bf16 %v7105_v42, %v7104_v41  ;;  %vm84_vm1 = vcmp.ne.f32.partialorder %v77_v8, %v77_v8  ;;  %v7127_v2 = vld [vmem:[#allocation54_spill] sm:$0xff]  ;;  %v73_v46 = vld [vmem:[#allocation5 + $0x18] sm:$0x3f] }
 0x1c4   :  { %4537 = vmatpush3.bf16.msra.mxu1 %v4536_v52  ;;  %v4554_v52 = vpack.c.bf16 %v7109_v38, %v7108_v44  ;;  %vm87_vm4 = vcmp.ne.f32.partialorder %v80_v61, %v80_v61 }
 0x1c5   :  { %4538 = vmatprep.subr.bf16.mxu1 %v6957_v43  ;;  %v94_v13 = vsel %vm87_vm4, %v73_v46, %v80_v61 }
 0x1c6   :  { %4383 = vmatpush1.bf16.msra.mxu0 %v4382_v55  ;;  %v7121_v55 = vld [vmem:[#allocation28_spill] sm:$0xff] }
 0x1c7   :  { %4385 = vmatprep.subr.bf16.mxu0 %v4384_v23  ;;  %v7123_v23 = vld [vmem:[#allocation29_spill] sm:$0xff] }
 0x1c8   :  { %4540 = vmatpush3.bf16.msra.mxu1 %v4539_v16  ;;  %v6336_v16 = vshrl.u32 %v107_v58, 7 }
 0x1c9   :  { %4541 = vmatprep.subr.bf16.mxu1 %v6957_v43 }
 0x1ca   :  { %4387 = vmatpush1.bf16.msra.mxu0 %v4386_v10  ;;  %v70_v10 = vld [vmem:[#allocation5] sm:$0x3f]  ;;  %v113_v14 = vsub.s32 1, %v6336_v16  ;;  %v117_v28 = vsub.s32 2, %v6336_v16  ;;  %v121_v6 = vsub.s32 3, %v6336_v16  ;;  %v129_v61 = vsub.s32 5, %v6336_v16 }
 0x1cb   :  { %4389 = vmatprep.subr.bf16.mxu0 %v4388_v7  ;;  %v71_v7 = vld [vmem:[#allocation5 + $0x8] sm:$0x3f]  ;;  %v91_v54 = vsel %vm84_vm1, %v70_v10, %v77_v8  ;;  %v81_v8 = vld [vmem:[#allocation7 + $0x20] sm:$0x3f] }
 0x1cc   :  { %4543 = vmatpush3.bf16.msra.mxu1 %v4542_v12  ;;  %v109_v12 = vsub.s32 0, %v6336_v16  ;;  %v98_v32 = vsub.f32 %v70_v10, %v91_v54  ;;  %vm88_vm9 = vcmp.ne.f32.partialorder %v81_v8, %v81_v8  ;;  %v75_v10 = vld [vmem:[#allocation5 + $0x28] sm:$0x3f] }
 0x1cd   :  { %4544 = vmatprep.subr.bf16.mxu1 %v6957_v43 }
 0x1ce   :  { %4391 = vmatpush1.bf16.msra.mxu0 %v4390_v29  ;;  %v6344_v29 = vld [vmem:[#allocation2] sm:$0xff] }
 0x1cf   :  { %4393 = vmatprep.subr.bf16.mxu0 %v4392_v24  ;;  %v92_v24 = vsel %vm85_vm2, %v71_v7, %v78_v33  ;;  %v110_v11 = vrot.slane %v6344_v29, %v109_v12  ;;  %v118_v3 = vrot.slane %v6344_v29, %v117_v28  ;;  %v122_v51 = vrot.slane %v6344_v29, %v121_v6  ;;  %v74_v33 = vld [vmem:[#allocation5 + $0x20] sm:$0x3f] }
 0x1d0   :  { %4546 = vmatpush3.bf16.msra.mxu1 %v4545_v22  ;;  %v7129_v22 = vld [vmem:[#allocation67_spill] sm:$0xff]  ;;  %v99_v9 = vsub.f32 %v71_v7, %v92_v24  ;;  %v76_v7 = vld [vmem:[#allocation5 + $0x30] sm:$0x3f]  ;;  %v133_v12 = vsub.s32 6, %v6336_v16  ;;  %v130_v24 = vrot.slane %v6344_v29, %v129_v61 }
 0x1d1   :  { %4547 = vmatprep.subr.bf16.mxu1 %v6957_v43 }
 0x1d2   :  { %4395 = vmatpush1.bf16.msra.mxu0 %v4394_v36  ;;  %v93_v36 = vsel %vm86_vm3, %v72_v35, %v79_v25  ;;  %v125_v25 = vsub.s32 4, %v6336_v16  ;;  %v134_v28 = vrot.slane %v6344_v29, %v133_v12 }
 0x1d3   :  { %4397 = vmatprep.subr.bf16.mxu0 %v4396_v62  ;;  %v114_v62 = vrot.slane %v6344_v29, %v113_v14 }
 0x1d4   :  { %4549 = vmatpush3.bf16.msra.mxu1 %v4548_v26  ;;  %v101_v26 = vsub.f32 %v73_v46, %v94_v13  ;;  %v126_v54 = vrot.slane %v6344_v29, %v125_v25 }
 0x1d5   :  { %4550 = vmatprep.subr.bf16.mxu1 %v6957_v43  ;;  %v143_v21 = vmul.f32 %v114_v62, %v99_v9 }
 0x1d6   :  { %4399 = vmatpush1.bf16.msra.mxu0 %v4398_v57  ;;  %v145_v39 = vmul.f32 %v122_v51, %v101_v26 }
 0x1d7   :  { %4401 = vmatprep.subr.bf16.mxu0 %v4400_v20  ;;  %v150_v20 = vand.u32 2147483647, %v143_v21 }
 0x1d8   :  { %4552 = vmatpush3.bf16.msra.mxu1 %v4551_v27  ;;  %v152_v27 = vand.u32 2147483647, %v145_v39 }
 0x1d9   :  { %4553 = vmatprep.subr.bf16.mxu1 %v6957_v43  ;;  %vm157_vm6 = vcmp.lt.f32.partialorder %v150_v20, 0.11111111 }
 0x1da   :  { %4403 = vmatpush1.bf16.msra.mxu0 %v4402_v50  ;;  %v166_v44 = vmul.f32 %v152_v27, %v152_v27  ;;  %vm159_vm8 = vcmp.lt.f32.partialorder %v152_v27, 0.11111111 }
 0x1db   :  { %4405 = vmatprep.subr.bf16.mxu0 %v7036_v1  ;;  %v7116_v1 = vld [vmem:[#allocation73_spill] sm:$0xff] }
 0x1dc   :  { %4555 = vmatpush3.bf16.msra.mxu1 %v4554_v52  ;;  %v3542_v52 = vadd.f32 -0.055555556, %v150_v20 }
 0x1dd   :  { %2759 = vmatmul.mubr.f32.vlgmr.msra.gmra.mrb[2].mxu0 %v7022_v17  ;;  %4556 = vmatprep.subr.bf16.mxu1 %v6957_v43 }
 0x1de   :  { %4407 = vmatpush1.bf16.msra.mxu0 %v7038_v56  ;;  %2861 = vmatprep.mubr.f32.mxu0 %v6775_v18  ;;  %v7117_v56 = vld [vmem:[#allocation65_spill] sm:$0xff] }
 0x1df   :  { %4409 = vmatprep.subr.bf16.mxu0 %v7110_v53  ;;  %3823 = vmatmul.mubr.f32.vlgmr.msra.gmra.mrb[2].mxu1 %v7022_v17 }
 0x1e0   :  { %4558 = vmatpush3.bf16.msra.mxu1 %v7111_v15  ;;  %3857 = vmatprep.mubr.msk.f32.mxu1 %vm4756_vm0, %v6775_v18  ;;  %v7119_v18 = vld [vmem:[#allocation24_spill] sm:$0xff] }
 0x1e1   :  { %4559 = vmatprep.subr.bf16.mxu1 %v6957_v43 }
 0x1e2   :  { %4411 = vmatpush1.bf16.msra.mxu0 %v7112_v63 }
 0x1e3   :  { %4413 = vmatprep.subr.bf16.mxu0 %v7113_v0  ;;  %v3544_v0 = vadd.f32 -0.055555556, %v152_v27 }
 0x1e4   :  { %4561 = vmatpush3.bf16.msra.mxu1 %v7114_v47 }
 0x1e5   :  { %4562 = vmatprep.subr.bf16.mxu1 %v6957_v43 }
 0x1e6   :  { %4415 = vmatpush1.bf16.msra.mxu0 %v7115_v49 }
 0x1e7   :  { %4417 = vmatprep.subr.bf16.mxu0 %v7116_v1 }
 0x1e8   :  { %4564 = vmatpush3.bf16.msra.mxu1 %v7117_v56 }
 0x1e9   :  { %4565 = vmatprep.subr.bf16.mxu1 %v6957_v43 }
 0x1ea   :  { %4419 = vmatpush1.bf16.msra.mxu0 %v7118_v40 }
 0x1eb   :  { %4421 = vmatprep.subr.bf16.mxu0 %v7119_v18 }
 0x1ec   :  { %4567 = vmatpush3.bf16.msra.mxu1 %v7120_v37 }
 0x1ed   :  { %4568 = vmatprep.subr.bf16.mxu1 %v6957_v43 }
 0x1ee   :  { %4423 = vmatpush1.bf16.msra.mxu0 %v7121_v55 }
 0x1ef   :  { %4425 = vmatprep.subr.bf16.mxu0 %v7122_v31 }
 0x1f0   :  { %4570 = vmatpush3.bf16.msra.mxu1 %v7123_v23 }
 0x1f1   :  { %4571 = vmatprep.subr.bf16.mxu1 %v6957_v43 }
 0x1f2   :  { %4427 = vmatpush1.bf16.msra.mxu0 %v7124_v30  ;;  %v82_v30 = vld [vmem:[#allocation7 + $0x28] sm:$0x3f] }
 0x1f3   :  { %4429 = vmatprep.subr.bf16.mxu0 %v7125_v4  ;;  %v83_v4 = vld [vmem:[#allocation7 + $0x30] sm:$0x3f]  ;;  %vm89_vm10 = vcmp.ne.f32.partialorder %v82_v30, %v82_v30 }
 0x1f4   :  { %4573 = vmatpush3.bf16.msra.mxu1 %v7126_v19  ;;  %v95_v19 = vsel %vm88_vm9, %v74_v33, %v81_v8  ;;  %vm90_vm11 = vcmp.ne.f32.partialorder %v83_v4, %v83_v4 }
 0x1f5   :  { %4574 = vmatprep.subr.bf16.mxu1 %v6957_v43 }
 0x1f6   :  { %4431 = vmatpush1.bf16.msra.mxu0 %v7127_v2  ;;  %v96_v2 = vsel %vm89_vm10, %v75_v10, %v82_v30 }
 0x1f7   :  { %4433 = vmatprep.subr.bf16.mxu0 %v7128_v48  ;;  %v102_v48 = vsub.f32 %v74_v33, %v95_v19  ;;  %v103_v14 = vsub.f32 %v75_v10, %v96_v2 }
 0x1f8   :  { %4576 = vmatpush3.bf16.msra.mxu1 %v7060_v5  ;;  %v100_v5 = vsub.f32 %v72_v35, %v93_v36  ;;  %v97_v35 = vsel %vm90_vm11, %v76_v7, %v83_v4 }
 0x1f9   :  { %4577 = vmatprep.subr.bf16.mxu1 %v6957_v43  ;;  %v142_v43 = vmul.f32 %v110_v11, %v98_v32  ;;  %v104_v46 = vsub.f32 %v76_v7, %v97_v35  ;;  %v147_v32 = vmul.f32 %v130_v24, %v103_v14 }
 0x1fa   :  { %4435 = vmatpush1.bf16.msra.mxu0 %v7129_v22  ;;  %v144_v57 = vmul.f32 %v118_v3, %v100_v5  ;;  %v146_v22 = vmul.f32 %v126_v54, %v102_v48 }
 0x1fb   :  { %v149_v60 = vand.u32 2147483647, %v142_v43  ;;  %v148_v11 = vmul.f32 %v134_v28, %v104_v46  ;;  %v154_v6 = vand.u32 2147483647, %v147_v32 }
 0x1fc   :  { %4579 = vmatpush3.bf16.msra.mxu1 %v7066_v34  ;;  %v151_v41 = vand.u32 2147483647, %v144_v57  ;;  %v164_v34 = vmul.f32 %v150_v20, %v150_v20  ;;  %v153_v36 = vand.u32 2147483647, %v146_v22 }
 0x1fd   :  { %2863 = vmatmul.mubr.f32.vlgmr.msra.gmra.mrb[2].mxu0 %v7022_v17  ;;  %v163_v42 = vmul.f32 %v149_v60, %v149_v60  ;;  %v3541_v50 = vadd.f32 -0.055555556, %v149_v60  ;;  %vm156_vm5 = vcmp.lt.f32.partialorder %v149_v60, 0.11111111  ;;  %v155_v9 = vand.u32 2147483647, %v148_v11 }
 0x1fe   :  { %v165_v45 = vmul.f32 %v151_v41, %v151_v41  ;;  %v171_v38 = vmul.f32 4.5, %v164_v34  ;;  %v3543_v15 = vadd.f32 -0.055555556, %v151_v41  ;;  %vm158_vm7 = vcmp.lt.f32.partialorder %v151_v41, 0.11111111 }
 0x1ff   :  { %3858 = vmatmul.mubr.f32.vlgmr.msra.gmra.mrb[2].mxu1 %v7022_v17  ;;  %v170_v59 = vmul.f32 4.5, %v163_v42  ;;  %v173_v17 = vmul.f32 4.5, %v166_v44  ;;  %v167_v62 = vmul.f32 %v153_v36, %v153_v36  ;;  %v168_v13 = vmul.f32 %v154_v6, %v154_v6 }
 0x200   :  { %v172_v53 = vmul.f32 4.5, %v165_v45  ;;  %v185_v47 = vsel %vm157_vm6, %v171_v38, %v3542_v52  ;;  %v169_v5 = vmul.f32 %v155_v9, %v155_v9  ;;  %v3545_v3 = vadd.f32 -0.055555556, %v153_v36 }
 0x201   :  { %v184_v63 = vsel %vm156_vm5, %v170_v59, %v3541_v50  ;;  %v187_v37 = vsel %vm159_vm8, %v173_v17, %v3544_v0  ;;  %v174_v16 = vmul.f32 4.5, %v167_v62  ;;  %vm160_vm12 = vcmp.lt.f32.partialorder %v153_v36, 0.11111111 }
 0x202   :  { %v186_v56 = vsel %vm158_vm7, %v172_v53, %v3543_v15  ;;  %v175_v43 = vmul.f32 4.5, %v168_v13  ;;  %v3546_v26 = vadd.f32 -0.055555556, %v154_v6  ;;  %vm161_vm13 = vcmp.lt.f32.partialorder %v154_v6, 0.11111111 }
 0x203   :  { %v176_v51 = vmul.f32 4.5, %v169_v5  ;;  %v3547_v21 = vadd.f32 -0.055555556, %v155_v9  ;;  %v188_v57 = vsel %vm160_vm12, %v174_v16, %v3545_v3  ;;  %vm162_vm14 = vcmp.lt.f32.partialorder %v155_v9, 0.11111111 }
 0x204   :  { %v189_v29 = vsel %vm161_vm13, %v175_v43, %v3546_v26 }
 0x205   :  { %v190_v20 = vsel %vm162_vm14, %v176_v51, %v3547_v21 }
 0x210   :  { %v1154_v49 = vpop.f32.mrb[0].mxu0 }
 0x211   :  { %v3510_v1 = vmul.f32 %v1154_v49, %v184_v63  ;;  %v1156_v40 = vpop.f32.mrb[1].mxu0 }
 0x212   :  { %v3511_v18 = vmul.f32 %v1156_v40, %v185_v47  ;;  %v2009_v55 = vpop.f32.mrb[0].mxu1 }
 0x213   :  { %3517 = vst [vmem:[#allocation10] sm:$0x3f] %v3510_v1  ;;  %v3512_v58 = vmul.f32 %v2009_v55, %v186_v56  ;;  %v2011_v31 = vpop.f32.mrb[1].mxu1 }
 0x214   :  { %3518 = vst [vmem:[#allocation10 + $0x8] sm:$0x3f] %v3511_v18  ;;  %v3513_v23 = vmul.f32 %v2011_v31, %v187_v37 }
 0x215   :  { %3519 = vst [vmem:[#allocation10 + $0x10] sm:$0x3f] %v3512_v58 }
 0x216   :  { %3520 = vst [vmem:[#allocation10 + $0x18] sm:$0x3f] %v3513_v23 }
 0x2d0   :  { %v2864_v60 = vpop.f32.mrb[2].mxu0 }
 0x2d1   :  { %v3514_v39 = vmul.f32 %v2864_v60, %v188_v57  ;;  %v2866_v41 = vpop.f32.mrb[3].mxu0 }
 0x2d2   :  { %v3515_v42 = vmul.f32 %v2866_v41, %v189_v29  ;;  %v3506_v27 = vpop.f32.mrb[2].mxu1 }
 0x2d3   :  { %3521 = vst [vmem:[#allocation10 + $0x20] sm:$0x3f] %v3514_v39  ;;  %v3516_v34 = vmul.f32 %v3506_v27, %v190_v20  ;;  %v3859_v45 = vpop.f32.mrb[3].mxu1 }
 0x2d4   :  { %3522 = vst [vmem:[#allocation10 + $0x28] sm:$0x3f] %v3515_v42 }
 0x2d5   :  { %3523 = vst [vmem:[#allocation10 + $0x30] sm:$0x3f] %v3516_v34 }
 0x2d6   :  { %4729 = shalt.err (!%p4726_p8)
}
 0x2d7   :  { %s4730_s20 = scalar_lea.hbm %s6382_s5, 896 }
 0x2d8   :  { %p4731_p9 = scmp.ne.s32.totalorder %s6382_s5, %s4730_s20  ;;  %p4734_p10 = scmp.lt.u32.totalorder %s4730_s20, %s6382_s5 }
 0x2da   :  { %p4736_p11 = pnand %p4734_p10, %p4731_p9 }
 0x2dc   :  { %4739 = shalt.err (!%p4736_p11)
}
 0x2dd   :  { %3533 = dma.vmem_to_hbm [thread:$0]  %s3531_s16, 896, %s6382_s5, [#allocation4]  }
 0x2de   :  { %4746 = dma.done.wait [#allocation4], 896  }
 0x2df   :  { %4747 = vsyncadd [#allocation4], 4294966400 }
 0x2e0   :  { %3537 = vsyncpa [#allocation3], 1 }
 0x2e1   :  { %3538 = vsyncpa [#allocation6], 1 }
 0x2e2   :  { %3539 = vsyncpa [#allocation9], 1 }
 0x2e3   :  { %3540 = vsyncpa [#allocation4], 1 }

</bundles_post_ra>
